<compile_context>
chip_gen: v7x
topology: tpu7x:2x2x1
jax: 0.10.0
libtpu: 0.0.40
codegen_flags: <defaults>
</compile_context>

<pallas_src>
import functools

import jax
import jax.numpy as jnp
from jax.experimental import pallas as pl
from jax.experimental.pallas import tpu as pltpu

IN_FEATURES = 28 * 28   # 784 — used as a full-dim block (no K padding needed)
HIDDEN = 512
OUT_FEATURES = 10
OUT_PAD = 128           # lane-dense output stores / full MXU columns


def _round_up(v, m):
    return ((v + m - 1) // m) * m


def _mlp_kernel(x_ref, w1_ref, b1_ref, w2_ref, b2_ref, w3_ref, b3_ref, o_ref):
    # One batch tile per grid step; weights/biases are fully VMEM-resident.
    # Matmul inputs are bf16 (x arrives bf16), accumulation + bias/ReLU are f32.
    h1 = jnp.dot(x_ref[...], w1_ref[...],
                 preferred_element_type=jnp.float32) + b1_ref[...]
    h1 = jnp.maximum(h1, 0.0)
    h2 = jnp.dot(h1.astype(jnp.bfloat16), w2_ref[...],
                 preferred_element_type=jnp.float32) + b2_ref[...]
    h2 = jnp.maximum(h2, 0.0)
    out = jnp.dot(h2.astype(jnp.bfloat16), w3_ref[...],
                  preferred_element_type=jnp.float32) + b3_ref[...]
    o_ref[...] = out.astype(o_ref.dtype)


@functools.partial(jax.jit, static_argnames=("block_b",))
def mlp_forward(x, kernel_params, *, block_b=256):
    """x: (B, 1, 28, 28) f32 NCHW -> logits (B, 10) f32."""
    w1, b1, w2, b2, w3, b3 = kernel_params
    B = x.shape[0]

    # nn.Flatten + bf16 cast fused in the wrapper; no 896-column pad copy.
    x2d = x.reshape(B, -1).astype(jnp.bfloat16)          # (B, 784) bf16

    # Adaptive batch tile: small batches pad only to a multiple of 16
    # (bf16 sublane packing), large batches use the full tile.
    tb = min(block_b, _round_up(B, 16))
    b_pad = _round_up(B, tb)
    if b_pad != B:
        x2d = jnp.pad(x2d, ((0, b_pad - B), (0, 0)))

    grid = (b_pad // tb,)                                 # keep >=2 / even on v7x for dual-TC
    resident = lambda i: (0, 0)    # weights & biases: same block every grid step

    flops = 2 * b_pad * (IN_FEATURES * HIDDEN + HIDDEN * HIDDEN + HIDDEN * OUT_PAD)
    bytes_accessed = (
        b_pad * IN_FEATURES * 2                             # bf16 x stream
        + sum(p.size * p.dtype.itemsize for p in kernel_params)
        + b_pad * OUT_PAD * 4                               # f32 output writeback
    )

    out = pl.pallas_call(
        _mlp_kernel,
        out_shape=jax.ShapeDtypeStruct((b_pad, OUT_PAD), jnp.float32),
        grid=grid,
        in_specs=[
            pl.BlockSpec((tb, IN_FEATURES), lambda i: (i, 0)),    # streamed bf16 activations
            pl.BlockSpec((IN_FEATURES, HIDDEN), resident),        # w1 (bf16, 784 rows, full-dim)
            pl.BlockSpec((1, HIDDEN), resident),                  # b1 (f32)
            pl.BlockSpec((HIDDEN, HIDDEN), resident),             # w2 (bf16)
            pl.BlockSpec((1, HIDDEN), resident),                  # b2 (f32)
            pl.BlockSpec((HIDDEN, OUT_PAD), resident),            # w3 padded (bf16)
            pl.BlockSpec((1, OUT_PAD), resident),                 # b3 padded (f32)
        ],
        out_specs=pl.BlockSpec((tb, OUT_PAD), lambda i: (i, 0)),
        compiler_params=pltpu.CompilerParams(
            dimension_semantics=("parallel",)),                   # dual-TC on v7x
        cost_estimate=pl.CostEstimate(
            flops=flops, transcendentals=0, bytes_accessed=bytes_accessed),
    )(x2d, w1, b1, w2, b2, w3, b3)

    return out[:B, :OUT_FEATURES]


def init_params(key):
    """f32 params matching nn.Linear defaults; W stored (in, out), b (1, out)."""
    def linear(key, fan_in, fan_out):
        kw, kb = jax.random.split(key)
        bound = 1.0 / jnp.sqrt(fan_in)
        w = jax.random.uniform(kw, (fan_in, fan_out), jnp.float32, -bound, bound)
        b = jax.random.uniform(kb, (1, fan_out), jnp.float32, -bound, bound)
        return w, b

    k1, k2, k3 = jax.random.split(key, 3)
    w1, b1 = linear(k1, IN_FEATURES, HIDDEN)
    w2, b2 = linear(k2, HIDDEN, HIDDEN)
    w3, b3 = linear(k3, HIDDEN, OUT_FEATURES)
    return (w1, b1, w2, b2, w3, b3)


def prepare_params(params):
    """One-time kernel layout prep: pad layer-3 outputs to 128 lanes (zeros),
    cast weights to bf16 (biases stay f32). w1 is NOT padded — the kernel uses
    the full 784 K dim directly."""
    w1, b1, w2, b2, w3, b3 = params
    w3p = jnp.pad(w3, ((0, 0), (0, OUT_PAD - OUT_FEATURES)))
    b3p = jnp.pad(b3, ((0, 0), (0, OUT_PAD - OUT_FEATURES)))
    return (w1.astype(jnp.bfloat16), b1,
            w2.astype(jnp.bfloat16), b2,
            w3p.astype(jnp.bfloat16), b3p)


if __name__ == "__main__":
    key = jax.random.PRNGKey(0)
    kx, kp = jax.random.split(key)

    B = 8
    x = jax.random.normal(kx, (B, 1, 28, 28), jnp.float32)   # MNIST-like NCHW input
    params = init_params(kp)
    kparams = prepare_params(params)

    out = mlp_forward(x, kparams, block_b=256)
    jax.block_until_ready(out)
    assert out.shape == (B, OUT_FEATURES)

    # Reference 1: mirror the kernel's bf16 matmul inputs (tight check of the
    # kernel implementation itself).
    w1b, b1f, w2b, b2f, w3b, b3f = kparams
    x2d = x.reshape(B, -1).astype(jnp.bfloat16)
    h = jnp.maximum(jnp.dot(x2d, w1b, preferred_element_type=jnp.float32) + b1f, 0.0)
    h = jnp.maximum(jnp.dot(h.astype(jnp.bfloat16), w2b,
                            preferred_element_type=jnp.float32) + b2f, 0.0)
    ref_bf16 = (jnp.dot(h.astype(jnp.bfloat16), w3b,
                        preferred_element_type=jnp.float32) + b3f)[:, :OUT_FEATURES]
    assert jnp.allclose(out, ref_bf16, atol=2e-3, rtol=2e-3)

    # Reference 2: pure f32 forward of the original PyTorch module (loose check —
    # only difference is bf16 quantization of matmul inputs).
    w1, b1, w2, b2, w3, b3 = params
    r = jnp.maximum(x.reshape(B, -1) @ w1 + b1, 0.0)
    r = jnp.maximum(r @ w2 + b2, 0.0)
    r = r @ w3 + b3
    assert jnp.allclose(out, r, atol=7e-2, rtol=7e-2)

    print("KERNEL_OK")
</pallas_src>

<mosaic_0001>
module attributes {stable_mosaic.version = 11 : i64} {
  func.func @_mlp_kernel(%arg0: i32, %arg1: memref<16x784xbf16, #tpu.memory_space<vmem>>, %arg2: memref<784x512xbf16, #tpu.memory_space<vmem>>, %arg3: memref<1x512xf32, #tpu.memory_space<vmem>>, %arg4: memref<512x512xbf16, #tpu.memory_space<vmem>>, %arg5: memref<1x512xf32, #tpu.memory_space<vmem>>, %arg6: memref<512x128xbf16, #tpu.memory_space<vmem>>, %arg7: memref<1x128xf32, #tpu.memory_space<vmem>>, %arg8: memref<16x128xf32, #tpu.memory_space<vmem>>) attributes {dimension_semantics = [#tpu.dimension_semantics<parallel>], iteration_bounds = array<i64: 1>, scalar_prefetch = 0 : i64, scratch_operands = 0 : i64, tpu.core_type = #tpu.core_type<tc>, window_params = [{transform_indices = @transform_0, window_bounds = array<i64: 16, 784>}, {pipeline_mode = #tpu.pipeline_mode<synchronous>, transform_indices = @transform_1, window_bounds = array<i64: 784, 512>}, {pipeline_mode = #tpu.pipeline_mode<synchronous>, transform_indices = @transform_2, window_bounds = array<i64: 1, 512>}, {pipeline_mode = #tpu.pipeline_mode<synchronous>, transform_indices = @transform_3, window_bounds = array<i64: 512, 512>}, {pipeline_mode = #tpu.pipeline_mode<synchronous>, transform_indices = @transform_4, window_bounds = array<i64: 1, 512>}, {pipeline_mode = #tpu.pipeline_mode<synchronous>, transform_indices = @transform_5, window_bounds = array<i64: 512, 128>}, {pipeline_mode = #tpu.pipeline_mode<synchronous>, transform_indices = @transform_6, window_bounds = array<i64: 1, 128>}, {transform_indices = @transform_7, window_bounds = array<i64: 16, 128>}]} {
    %c0 = arith.constant 0 : index
    %c0_0 = arith.constant 0 : index
    %0 = vector.load %arg1[%c0, %c0_0] : memref<16x784xbf16, #tpu.memory_space<vmem>>, vector<16x784xbf16>
    %c0_1 = arith.constant 0 : index
    %c0_2 = arith.constant 0 : index
    %1 = vector.load %arg2[%c0_1, %c0_2] : memref<784x512xbf16, #tpu.memory_space<vmem>>, vector<784x512xbf16>
    %cst = arith.constant dense<0.000000e+00> : vector<16x512xf32>
    %2 = tpu.matmul %0, %1, %cst {dimension_numbers = #tpu.dot_dimension_numbers<[1], [0], [0], [1], [0, 0, 1, 1], [], []>} : vector<16x784xbf16>, vector<784x512xbf16>, vector<16x512xf32> -> vector<16x512xf32>
    %c0_3 = arith.constant 0 : index
    %c0_4 = arith.constant 0 : index
    %3 = vector.load %arg3[%c0_3, %c0_4] : memref<1x512xf32, #tpu.memory_space<vmem>>, vector<1x512xf32>
    %4 = vector.broadcast %3 : vector<1x512xf32> to vector<16x512xf32>
    %5 = arith.addf %2, %4 : vector<16x512xf32>
    %cst_5 = arith.constant 0.000000e+00 : f32
    %6 = vector.broadcast %cst_5 : f32 to vector<16x512xf32>
    %7 = arith.maximumf %5, %6 : vector<16x512xf32>
    %8 = arith.truncf %7 : vector<16x512xf32> to vector<16x512xbf16>
    %c0_6 = arith.constant 0 : index
    %c0_7 = arith.constant 0 : index
    %9 = vector.load %arg4[%c0_6, %c0_7] : memref<512x512xbf16, #tpu.memory_space<vmem>>, vector<512x512xbf16>
    %cst_8 = arith.constant dense<0.000000e+00> : vector<16x512xf32>
    %10 = tpu.matmul %8, %9, %cst_8 {dimension_numbers = #tpu.dot_dimension_numbers<[1], [0], [0], [1], [0, 0, 1, 1], [], []>} : vector<16x512xbf16>, vector<512x512xbf16>, vector<16x512xf32> -> vector<16x512xf32>
    %c0_9 = arith.constant 0 : index
    %c0_10 = arith.constant 0 : index
    %11 = vector.load %arg5[%c0_9, %c0_10] : memref<1x512xf32, #tpu.memory_space<vmem>>, vector<1x512xf32>
    %12 = vector.broadcast %11 : vector<1x512xf32> to vector<16x512xf32>
    %13 = arith.addf %10, %12 : vector<16x512xf32>
    %cst_11 = arith.constant 0.000000e+00 : f32
    %14 = vector.broadcast %cst_11 : f32 to vector<16x512xf32>
    %15 = arith.maximumf %13, %14 : vector<16x512xf32>
    %16 = arith.truncf %15 : vector<16x512xf32> to vector<16x512xbf16>
    %c0_12 = arith.constant 0 : index
    %c0_13 = arith.constant 0 : index
    %17 = vector.load %arg6[%c0_12, %c0_13] : memref<512x128xbf16, #tpu.memory_space<vmem>>, vector<512x128xbf16>
    %cst_14 = arith.constant dense<0.000000e+00> : vector<16x128xf32>
    %18 = tpu.matmul %16, %17, %cst_14 {dimension_numbers = #tpu.dot_dimension_numbers<[1], [0], [0], [1], [0, 0, 1, 1], [], []>} : vector<16x512xbf16>, vector<512x128xbf16>, vector<16x128xf32> -> vector<16x128xf32>
    %c0_15 = arith.constant 0 : index
    %c0_16 = arith.constant 0 : index
    %19 = vector.load %arg7[%c0_15, %c0_16] : memref<1x128xf32, #tpu.memory_space<vmem>>, vector<1x128xf32>
    %20 = vector.broadcast %19 : vector<1x128xf32> to vector<16x128xf32>
    %21 = arith.addf %18, %20 : vector<16x128xf32>
    %c0_17 = arith.constant 0 : index
    %c0_18 = arith.constant 0 : index
    %22 = vector.load %arg8[%c0_17, %c0_18] : memref<16x128xf32, #tpu.memory_space<vmem>>, vector<16x128xf32>
    tpu.vector_store %arg8[%c0_17, %c0_18], %21 {strides = array<i32>} : memref<16x128xf32, #tpu.memory_space<vmem>>, vector<16x128xf32>,
    return
  }
  func.func @transform_0(%arg0: i32) -> (i32, i32) {
    %c0_i32 = arith.constant 0 : i32
    %c0_i32_0 = arith.constant 0 : i32
    return %arg0, %c0_i32 : i32, i32
  }
  func.func @transform_1(%arg0: i32) -> (i32, i32) {
    %c0_i32 = arith.constant 0 : i32
    %c0_i32_0 = arith.constant 0 : i32
    %c0_i32_1 = arith.constant 0 : i32
    return %c0_i32, %c0_i32_0 : i32, i32
  }
  func.func @transform_2(%arg0: i32) -> (i32, i32) {
    %c0_i32 = arith.constant 0 : i32
    %c0_i32_0 = arith.constant 0 : i32
    %c0_i32_1 = arith.constant 0 : i32
    return %c0_i32, %c0_i32_0 : i32, i32
  }
  func.func @transform_3(%arg0: i32) -> (i32, i32) {
    %c0_i32 = arith.constant 0 : i32
    %c0_i32_0 = arith.constant 0 : i32
    %c0_i32_1 = arith.constant 0 : i32
    return %c0_i32, %c0_i32_0 : i32, i32
  }
  func.func @transform_4(%arg0: i32) -> (i32, i32) {
    %c0_i32 = arith.constant 0 : i32
    %c0_i32_0 = arith.constant 0 : i32
    %c0_i32_1 = arith.constant 0 : i32
    return %c0_i32, %c0_i32_0 : i32, i32
  }
  func.func @transform_5(%arg0: i32) -> (i32, i32) {
    %c0_i32 = arith.constant 0 : i32
    %c0_i32_0 = arith.constant 0 : i32
    %c0_i32_1 = arith.constant 0 : i32
    return %c0_i32, %c0_i32_0 : i32, i32
  }
  func.func @transform_6(%arg0: i32) -> (i32, i32) {
    %c0_i32 = arith.constant 0 : i32
    %c0_i32_0 = arith.constant 0 : i32
    %c0_i32_1 = arith.constant 0 : i32
    return %c0_i32, %c0_i32_0 : i32, i32
  }
  func.func @transform_7(%arg0: i32) -> (i32, i32) {
    %c0_i32 = arith.constant 0 : i32
    %c0_i32_0 = arith.constant 0 : i32
    return %arg0, %c0_i32 : i32, i32
  }
}

</mosaic_0001>

<bundles_post_ra>
// kernel: mlp_forward.1
= control target key start
LH: loop header
LB: loop body
LE: loop exit
PB: predicated region body
PF: predicated region fallthrough
CT: control target
= control target key end

     0   :  { %12 = vsyncpa [#allocation3], 0  ;;  %s4249_s0 = inlined_call_operand.vmem [shape: bf16[16,784], index: 0, kind: input, shape index: {}]   ;;  %s4250_s1 = inlined_call_operand.hbm [shape: bf16[784,512], index: 1, kind: input, shape index: {}]   ;;  %s4251_s2 = inlined_call_operand.vmem [shape: f32[1,512], index: 2, kind: input, shape index: {}]   ;;  %s4252_s3 = inlined_call_operand.hbm [shape: bf16[512,512], index: 3, kind: input, shape index: {}]   ;;  %s4253_s4 = inlined_call_operand.vmem [shape: f32[1,512], index: 4, kind: input, shape index: {}]   ;;  %s4254_s5 = inlined_call_operand.vmem [shape: bf16[512,128], index: 5, kind: input, shape index: {}]   ;;  %s4255_s6 = inlined_call_operand.vmem [shape: f32[1,128], index: 6, kind: input, shape index: {}]   ;;  %s4256_s7 = inlined_call_operand.vmem [shape: f32[16,128], index: 7, kind: output, shape index: {}]  }
   0x1   :  { %13 = vsyncpa [#allocation5], 0  ;;  %s4022_s24 = smov [#allocation2]   ;;  %s3974_s28 = scalar_lea.hbm %s4250_s1, 25088 }
   0x2   :  { %s21_s25 = sshll.u32 %s4022_s24, 4  ;;  %p3975_p0 = scmp.ne.s32.totalorder %s4250_s1, %s3974_s28  ;;  %s22_s25 = int_to_ptr.vmem [resolvable:$true] %s21_s25 }
   0x3   :  { %p3978_p1 = scmp.lt.u32.totalorder %s3974_s28, %s4250_s1 }
   0x5   :  { %p3980_p2 = pnand %p3978_p1, %p3975_p0 }
   0x7   :  { %3983 = shalt.err (!%p3980_p2)
}
   0x8   :  { %s3984_s10 = scalar_lea.vmem %s22_s25, 25088  ;;  %p3989_p4 = scmp.lt.s32.totalorder %s22_s25, %s22_s25 }
   0x9   :  { %p3985_p3 = scmp.ne.s32.totalorder %s22_s25, %s3984_s10  ;;  %p3990_p5 = scmp.lt.s32.totalorder %s3984_s10, %s3984_s10 }
   0xb   :  { %p3991_p6 = por %p3990_p5, %p3989_p4 }
   0xd   :  { %p3992_p7 = pnand %p3991_p6, %p3985_p3 }
   0xf   :  { %3995 = shalt.err (!%p3992_p7)
}
  0x10   :  { %s4023_s11 = smov 256   ;;  %s4024_s12 = smov 16  }
  0x11   :  { %27 = dma.hbm_to_vmem [thread:$0]  %s4250_s1, 25088, %s22_s25, [#allocation3], %s4023_s11, %s4023_s11, %s4024_s12  }
  0x12   :  { %s4025_s15 = smov [#allocation4]   ;;  %s3996_s19 = scalar_lea.hbm %s4252_s3, 16384 }
  0x13   :  { %s35_s16 = sshll.u32 %s4025_s15, 4  ;;  %p3997_p8 = scmp.ne.s32.totalorder %s4252_s3, %s3996_s19  ;;  %s36_s16 = int_to_ptr.vmem [resolvable:$true] %s35_s16 }
  0x14   :  { %p4000_p9 = scmp.lt.u32.totalorder %s3996_s19, %s4252_s3 }
  0x16   :  { %p4002_p10 = pnand %p4000_p9, %p3997_p8 }
  0x18   :  { %4005 = shalt.err (!%p4002_p10)
}
  0x19   :  { %s4006_s24 = scalar_lea.vmem %s36_s16, 16384  ;;  %p4011_p12 = scmp.lt.s32.totalorder %s36_s16, %s36_s16 }
  0x1a   :  { %p4007_p11 = scmp.ne.s32.totalorder %s36_s16, %s4006_s24  ;;  %p4012_p13 = scmp.lt.s32.totalorder %s4006_s24, %s4006_s24 }
  0x1c   :  { %p4013_p0 = por %p4012_p13, %p4011_p12 }
  0x1e   :  { %p4014_p1 = pnand %p4013_p0, %p4007_p11 }
  0x20   :  { %4017 = shalt.err (!%p4014_p1)
}
  0x21   :  { %41 = dma.hbm_to_vmem [thread:$0]  %s4252_s3, 16384, %s36_s16, [#allocation5], %s4023_s11, %s4023_s11, %s4024_s12  }
  0x22   :  { %4018 = dma.done.wait [#allocation3], 25088  }
  0x23   :  { %4019 = vsyncadd [#allocation3], 4294942208 }
  0x24   :  { %4020 = dma.done.wait [#allocation5], 16384  }
  0x25   :  { %4021 = vsyncadd [#allocation5], 4294950912  ;;  %v3446_v0 = vld [vmem:[#allocation2 + $0x4] ss:$16 sps:$4 sm:$0xff]   ;;  %v3448_v1 = vld [vmem:[#allocation2 + $0xc] ss:$16 sps:$4 sm:$0xff]  }
  0x26   :  { %1300 = vmatprep.subr.bf16.mxu0 %v3446_v0  ;;  %v3450_v2 = vld [vmem:[#allocation2] ss:$16 sps:$4 sm:$0xff]   ;;  %v3451_v3 = vld [vmem:[#allocation2 + $0x8] ss:$16 sps:$4 sm:$0xff]   ;;  %1472 = vmatprep.subr.bf16.mxu1 %v3448_v1  ;;  %v3452_v4 = vld [vmem:[#allocation2 + $0x24] ss:$16 sps:$4 sm:$0xff]  }
  0x27   :  { %1301 = vmatpush1.bf16.msra.mxu0 %v3450_v2  ;;  %1473 = vmatpush1.bf16.msra.mxu1 %v3451_v3  ;;  %v3454_v5 = vld [vmem:[#allocation2 + $0x2c] ss:$16 sps:$4 sm:$0xff]   ;;  %v3456_v6 = vld [vmem:[#allocation2 + $0x20] ss:$16 sps:$4 sm:$0xff]   ;;  %v3457_v7 = vld [vmem:[#allocation2 + $0x28] ss:$16 sps:$4 sm:$0xff]  }
  0x28   :  { %1302 = vmatprep.subr.bf16.mxu0 %v3452_v4  ;;  %1474 = vmatprep.subr.bf16.mxu1 %v3454_v5  ;;  %v3458_v8 = vld [vmem:[#allocation2 + $0x44] ss:$16 sps:$4 sm:$0xff]   ;;  %v3460_v9 = vld [vmem:[#allocation2 + $0x4c] ss:$16 sps:$4 sm:$0xff]   ;;  %v3462_v10 = vld [vmem:[#allocation2 + $0x40] ss:$16 sps:$4 sm:$0xff]  }
  0x29   :  { %v3463_v11 = vld [vmem:[#allocation2 + $0x48] ss:$16 sps:$4 sm:$0xff]   ;;  %v3464_v12 = vld [vmem:[#allocation2 + $0x64] ss:$16 sps:$4 sm:$0xff]   ;;  %v3466_v13 = vld [vmem:[#allocation2 + $0x6c] ss:$16 sps:$4 sm:$0xff]  }
  0x2a   :  { %v3468_v14 = vld [vmem:[#allocation2 + $0x60] ss:$16 sps:$4 sm:$0xff]   ;;  %v3469_v15 = vld [vmem:[#allocation2 + $0x68] ss:$16 sps:$4 sm:$0xff]   ;;  %v3470_v16 = vld [vmem:[#allocation2 + $0x84] ss:$16 sps:$4 sm:$0xff]  }
  0x2b   :  { %1303 = vmatpush1.bf16.msra.mxu0 %v3456_v6  ;;  %1475 = vmatpush1.bf16.msra.mxu1 %v3457_v7  ;;  %v3472_v17 = vld [vmem:[#allocation2 + $0x8c] ss:$16 sps:$4 sm:$0xff]   ;;  %v3474_v18 = vld [vmem:[#allocation2 + $0x80] ss:$16 sps:$4 sm:$0xff]   ;;  %v3475_v19 = vld [vmem:[#allocation2 + $0x88] ss:$16 sps:$4 sm:$0xff]  }
  0x2c   :  { %1304 = vmatprep.subr.bf16.mxu0 %v3458_v8  ;;  %1476 = vmatprep.subr.bf16.mxu1 %v3460_v9  ;;  %v3476_v20 = vld [vmem:[#allocation2 + $0xa4] ss:$16 sps:$4 sm:$0xff]   ;;  %v3478_v21 = vld [vmem:[#allocation2 + $0xac] ss:$16 sps:$4 sm:$0xff]   ;;  %v3480_v22 = vld [vmem:[#allocation2 + $0xa0] ss:$16 sps:$4 sm:$0xff]  }
  0x2d   :  { %v3481_v23 = vld [vmem:[#allocation2 + $0xa8] ss:$16 sps:$4 sm:$0xff]   ;;  %v3482_v24 = vld [vmem:[#allocation2 + $0xc4] ss:$16 sps:$4 sm:$0xff]   ;;  %v3484_v25 = vld [vmem:[#allocation2 + $0xcc] ss:$16 sps:$4 sm:$0xff]  }
  0x2e   :  { %v3486_v26 = vld [vmem:[#allocation2 + $0xc0] ss:$16 sps:$4 sm:$0xff]   ;;  %v3487_v27 = vld [vmem:[#allocation2 + $0xc8] ss:$16 sps:$4 sm:$0xff]   ;;  %v3488_v28 = vld [vmem:[#allocation2 + $0xe4] ss:$16 sps:$4 sm:$0xff]  }
  0x2f   :  { %1305 = vmatpush1.bf16.msra.mxu0 %v3462_v10  ;;  %1477 = vmatpush1.bf16.msra.mxu1 %v3463_v11  ;;  %v3490_v29 = vld [vmem:[#allocation2 + $0xec] ss:$16 sps:$4 sm:$0xff]   ;;  %v3492_v30 = vld [vmem:[#allocation2 + $0xe0] ss:$16 sps:$4 sm:$0xff]   ;;  %v3493_v31 = vld [vmem:[#allocation2 + $0xe8] ss:$16 sps:$4 sm:$0xff]  }
  0x30   :  { %1306 = vmatprep.subr.bf16.mxu0 %v3464_v12  ;;  %1478 = vmatprep.subr.bf16.mxu1 %v3466_v13  ;;  %v3494_v32 = vld [vmem:[#allocation2 + $0x104] ss:$16 sps:$4 sm:$0xff]   ;;  %v3496_v33 = vld [vmem:[#allocation2 + $0x10c] ss:$16 sps:$4 sm:$0xff]   ;;  %v3498_v34 = vld [vmem:[#allocation2 + $0x100] ss:$16 sps:$4 sm:$0xff]  }
  0x31   :  { %v3499_v35 = vld [vmem:[#allocation2 + $0x108] ss:$16 sps:$4 sm:$0xff]   ;;  %v3500_v36 = vld [vmem:[#allocation2 + $0x124] ss:$16 sps:$4 sm:$0xff]   ;;  %v3502_v37 = vld [vmem:[#allocation2 + $0x12c] ss:$16 sps:$4 sm:$0xff]  }
  0x32   :  { %v3504_v38 = vld [vmem:[#allocation2 + $0x120] ss:$16 sps:$4 sm:$0xff]   ;;  %v3505_v39 = vld [vmem:[#allocation2 + $0x128] ss:$16 sps:$4 sm:$0xff]   ;;  %v3506_v40 = vld [vmem:[#allocation2 + $0x144] ss:$16 sps:$4 sm:$0xff]  }
  0x33   :  { %1307 = vmatpush1.bf16.msra.mxu0 %v3468_v14  ;;  %1479 = vmatpush1.bf16.msra.mxu1 %v3469_v15  ;;  %v3508_v41 = vld [vmem:[#allocation2 + $0x14c] ss:$16 sps:$4 sm:$0xff]   ;;  %v3510_v42 = vld [vmem:[#allocation2 + $0x140] ss:$16 sps:$4 sm:$0xff]   ;;  %v3511_v43 = vld [vmem:[#allocation2 + $0x148] ss:$16 sps:$4 sm:$0xff]  }
  0x34   :  { %1308 = vmatprep.subr.bf16.mxu0 %v3470_v16  ;;  %1480 = vmatprep.subr.bf16.mxu1 %v3472_v17  ;;  %v3512_v44 = vld [vmem:[#allocation2 + $0x164] ss:$16 sps:$4 sm:$0xff]   ;;  %v3514_v45 = vld [vmem:[#allocation2 + $0x16c] ss:$16 sps:$4 sm:$0xff]   ;;  %v3516_v46 = vld [vmem:[#allocation2 + $0x160] ss:$16 sps:$4 sm:$0xff]  }
  0x35   :  { %v3517_v47 = vld [vmem:[#allocation2 + $0x168] ss:$16 sps:$4 sm:$0xff]   ;;  %v3544_v48 = vld [vmem:[%s4249_s0 + $0x4] ss:$28 sps:$4 sm:$0xff]   ;;  %v3520_v50 = vld [vmem:[#allocation2 + $0x18c] ss:$16 sps:$4 sm:$0xff]  }
  0x36   :  { %v3518_v49 = vld [vmem:[#allocation2 + $0x184] ss:$16 sps:$4 sm:$0xff]   ;;  %1332 = vmatprep.mubr.bf16.mxu0 %v3544_v48  ;;  %1504 = vmatprep.mubr.bf16.mxu1 %v3544_v48  ;;  %v3522_v51 = vld [vmem:[#allocation2 + $0x180] ss:$16 sps:$4 sm:$0xff]   ;;  %v3523_v52 = vld [vmem:[#allocation2 + $0x188] ss:$16 sps:$4 sm:$0xff]  }
  0x37   :  { %1309 = vmatpush1.bf16.msra.mxu0 %v3474_v18  ;;  %1481 = vmatpush1.bf16.msra.mxu1 %v3475_v19  ;;  %v3524_v53 = vld [vmem:[#allocation2 + $0x1a4] ss:$16 sps:$4 sm:$0xff]   ;;  %v3526_v54 = vld [vmem:[#allocation2 + $0x1ac] ss:$16 sps:$4 sm:$0xff]   ;;  %v3528_v55 = vld [vmem:[#allocation2 + $0x1a0] ss:$16 sps:$4 sm:$0xff]  }
  0x38   :  { %1310 = vmatprep.subr.bf16.mxu0 %v3476_v20  ;;  %1482 = vmatprep.subr.bf16.mxu1 %v3478_v21  ;;  %v3529_v56 = vld [vmem:[#allocation2 + $0x1a8] ss:$16 sps:$4 sm:$0xff]   ;;  %v3530_v57 = vld [vmem:[#allocation2 + $0x1c4] ss:$16 sps:$4 sm:$0xff]   ;;  %v3532_v58 = vld [vmem:[#allocation2 + $0x1cc] ss:$16 sps:$4 sm:$0xff]  }
  0x39   :  { %v3534_v59 = vld [vmem:[#allocation2 + $0x1c0] ss:$16 sps:$4 sm:$0xff]   ;;  %v3535_v60 = vld [vmem:[#allocation2 + $0x1c8] ss:$16 sps:$4 sm:$0xff]   ;;  %v3536_v61 = vld [vmem:[#allocation2 + $0x1e4] ss:$16 sps:$4 sm:$0xff]  }
  0x3a   :  { %v3538_v62 = vld [vmem:[#allocation2 + $0x1ec] ss:$16 sps:$4 sm:$0xff]   ;;  %v3540_v63 = vld [vmem:[#allocation2 + $0x1e0] ss:$16 sps:$4 sm:$0xff]   ;;  %v3541_v0 = vld [vmem:[#allocation2 + $0x1e8] ss:$16 sps:$4 sm:$0xff]  }
  0x3b   :  { %1311 = vmatpush1.bf16.msra.mxu0 %v3480_v22  ;;  %1483 = vmatpush1.bf16.msra.mxu1 %v3481_v23  ;;  %v3547_v1 = vld [vmem:[#allocation2 + $0x204] ss:$16 sps:$4 sm:$0xff]   ;;  %v3550_v2 = vld [vmem:[#allocation2 + $0x20c] ss:$16 sps:$4 sm:$0xff]   ;;  %v3545_v4 = vld [vmem:[#allocation2 + $0x200] ss:$16 sps:$4 sm:$0xff]  }
  0x3c   :  { %1312 = vmatprep.subr.bf16.mxu0 %v3482_v24  ;;  %1484 = vmatprep.subr.bf16.mxu1 %v3484_v25  ;;  %v3542_v3 = vld [vmem:[%s4249_s0] ss:$28 sps:$4 sm:$0xff]   ;;  %v3548_v5 = vld [vmem:[#allocation2 + $0x208] ss:$16 sps:$4 sm:$0xff]   ;;  %v3553_v6 = vld [vmem:[#allocation2 + $0x224] ss:$16 sps:$4 sm:$0xff]  }
  0x3d   :  { %v3556_v7 = vld [vmem:[#allocation2 + $0x22c] ss:$16 sps:$4 sm:$0xff]   ;;  %v3551_v8 = vld [vmem:[#allocation2 + $0x220] ss:$16 sps:$4 sm:$0xff]   ;;  %v3554_v9 = vld [vmem:[#allocation2 + $0x228] ss:$16 sps:$4 sm:$0xff]  }
  0x3e   :  { %v3559_v10 = vld [vmem:[#allocation2 + $0x244] ss:$16 sps:$4 sm:$0xff]   ;;  %v3562_v11 = vld [vmem:[#allocation2 + $0x24c] ss:$16 sps:$4 sm:$0xff]   ;;  %v3557_v12 = vld [vmem:[#allocation2 + $0x240] ss:$16 sps:$4 sm:$0xff]  }
  0x3f   :  { %1313 = vmatpush1.bf16.msra.mxu0 %v3486_v26  ;;  %1485 = vmatpush1.bf16.msra.mxu1 %v3487_v27  ;;  %v3560_v13 = vld [vmem:[#allocation2 + $0x248] ss:$16 sps:$4 sm:$0xff]   ;;  %v3565_v14 = vld [vmem:[#allocation2 + $0x264] ss:$16 sps:$4 sm:$0xff]   ;;  %v3568_v15 = vld [vmem:[#allocation2 + $0x26c] ss:$16 sps:$4 sm:$0xff]  }
  0x40   :  { %1314 = vmatprep.subr.bf16.mxu0 %v3488_v28  ;;  %1486 = vmatprep.subr.bf16.mxu1 %v3490_v29  ;;  %v3563_v16 = vld [vmem:[#allocation2 + $0x260] ss:$16 sps:$4 sm:$0xff]   ;;  %v3566_v17 = vld [vmem:[#allocation2 + $0x268] ss:$16 sps:$4 sm:$0xff]   ;;  %v3571_v18 = vld [vmem:[#allocation2 + $0x284] ss:$16 sps:$4 sm:$0xff]  }
  0x41   :  { %v3574_v19 = vld [vmem:[#allocation2 + $0x28c] ss:$16 sps:$4 sm:$0xff]   ;;  %v3569_v20 = vld [vmem:[#allocation2 + $0x280] ss:$16 sps:$4 sm:$0xff]   ;;  %v3572_v21 = vld [vmem:[#allocation2 + $0x288] ss:$16 sps:$4 sm:$0xff]  }
  0x42   :  { %v3577_v22 = vld [vmem:[#allocation2 + $0x2a4] ss:$16 sps:$4 sm:$0xff]   ;;  %v3580_v23 = vld [vmem:[#allocation2 + $0x2ac] ss:$16 sps:$4 sm:$0xff]   ;;  %v3575_v24 = vld [vmem:[#allocation2 + $0x2a0] ss:$16 sps:$4 sm:$0xff]  }
  0x43   :  { %1315 = vmatpush1.bf16.msra.mxu0 %v3492_v30  ;;  %1487 = vmatpush1.bf16.msra.mxu1 %v3493_v31  ;;  %v3578_v25 = vld [vmem:[#allocation2 + $0x2a8] ss:$16 sps:$4 sm:$0xff]   ;;  %v3583_v26 = vld [vmem:[#allocation2 + $0x2c4] ss:$16 sps:$4 sm:$0xff]   ;;  %v3586_v27 = vld [vmem:[#allocation2 + $0x2cc] ss:$16 sps:$4 sm:$0xff]  }
  0x44   :  { %1316 = vmatprep.subr.bf16.mxu0 %v3494_v32  ;;  %1488 = vmatprep.subr.bf16.mxu1 %v3496_v33  ;;  %v3581_v28 = vld [vmem:[#allocation2 + $0x2c0] ss:$16 sps:$4 sm:$0xff]   ;;  %v3584_v29 = vld [vmem:[#allocation2 + $0x2c8] ss:$16 sps:$4 sm:$0xff]   ;;  %v3589_v31 = vld [vmem:[#allocation2 + $0x2e4] ss:$16 sps:$4 sm:$0xff]  }
  0x45   :  { %v3643_v30 = vld [vmem:[%s4249_s0 + $0xc] ss:$28 sps:$4 sm:$0xff]   ;;  %v3587_v33 = vld [vmem:[#allocation2 + $0x2e0] ss:$16 sps:$4 sm:$0xff]   ;;  %vm1296_vm0 = vcmask 130048  }
  0x46   :  { %v3592_v32 = vld [vmem:[#allocation2 + $0x2ec] ss:$16 sps:$4 sm:$0xff]  }
  0x47   :  { %1317 = vmatpush1.bf16.msra.mxu0 %v3498_v34  ;;  %1489 = vmatpush1.bf16.msra.mxu1 %v3499_v35  ;;  %v3590_v34 = vld [vmem:[#allocation2 + $0x2e8] ss:$16 sps:$4 sm:$0xff]   ;;  %v3595_v35 = vld [vmem:[#allocation2 + $0x304] ss:$16 sps:$4 sm:$0xff]   ;;  %v3616_v48 = vld [vmem:[#allocation2 + $0x36c] ss:$16 sps:$4 sm:$0xff]  }
  0x48   :  { %1318 = vmatprep.subr.bf16.mxu0 %v3500_v36  ;;  %1490 = vmatprep.subr.bf16.mxu1 %v3502_v37  ;;  %v3598_v36 = vld [vmem:[#allocation2 + $0x30c] ss:$16 sps:$4 sm:$0xff]   ;;  %v3593_v37 = vld [vmem:[#allocation2 + $0x300] ss:$16 sps:$4 sm:$0xff]  }
  0x4b   :  { %1319 = vmatpush1.bf16.msra.mxu0 %v3504_v38  ;;  %1491 = vmatpush1.bf16.msra.mxu1 %v3505_v39  ;;  %v3596_v38 = vld [vmem:[#allocation2 + $0x308] ss:$16 sps:$4 sm:$0xff]   ;;  %v3601_v39 = vld [vmem:[#allocation2 + $0x324] ss:$16 sps:$4 sm:$0xff]  }
  0x4c   :  { %1320 = vmatprep.subr.bf16.mxu0 %v3506_v40  ;;  %1492 = vmatprep.subr.bf16.mxu1 %v3508_v41  ;;  %v3604_v40 = vld [vmem:[#allocation2 + $0x32c] ss:$16 sps:$4 sm:$0xff]   ;;  %v3599_v41 = vld [vmem:[#allocation2 + $0x320] ss:$16 sps:$4 sm:$0xff]  }
  0x4f   :  { %1321 = vmatpush1.bf16.msra.mxu0 %v3510_v42  ;;  %1493 = vmatpush1.bf16.msra.mxu1 %v3511_v43  ;;  %v3602_v42 = vld [vmem:[#allocation2 + $0x328] ss:$16 sps:$4 sm:$0xff]   ;;  %v3607_v43 = vld [vmem:[#allocation2 + $0x344] ss:$16 sps:$4 sm:$0xff]  }
  0x50   :  { %1322 = vmatprep.subr.bf16.mxu0 %v3512_v44  ;;  %1494 = vmatprep.subr.bf16.mxu1 %v3514_v45  ;;  %v3610_v44 = vld [vmem:[#allocation2 + $0x34c] ss:$16 sps:$4 sm:$0xff]   ;;  %v3605_v45 = vld [vmem:[#allocation2 + $0x340] ss:$16 sps:$4 sm:$0xff]  }
  0x53   :  { %1323 = vmatpush1.bf16.msra.mxu0 %v3516_v46  ;;  %1495 = vmatpush1.bf16.msra.mxu1 %v3517_v47  ;;  %v3608_v46 = vld [vmem:[#allocation2 + $0x348] ss:$16 sps:$4 sm:$0xff]   ;;  %v3613_v47 = vld [vmem:[#allocation2 + $0x364] ss:$16 sps:$4 sm:$0xff]  }
  0x54   :  { %1324 = vmatprep.subr.bf16.mxu0 %v3518_v49  ;;  %1496 = vmatprep.subr.bf16.mxu1 %v3520_v50  ;;  %v3611_v49 = vld [vmem:[#allocation2 + $0x360] ss:$16 sps:$4 sm:$0xff]   ;;  %v3614_v50 = vld [vmem:[#allocation2 + $0x368] ss:$16 sps:$4 sm:$0xff]  }
  0x57   :  { %1325 = vmatpush1.bf16.msra.mxu0 %v3522_v51  ;;  %1497 = vmatpush1.bf16.msra.mxu1 %v3523_v52  ;;  %v3619_v51 = vld [vmem:[#allocation2 + $0x384] ss:$16 sps:$4 sm:$0xff]   ;;  %v3622_v52 = vld [vmem:[#allocation2 + $0x38c] ss:$16 sps:$4 sm:$0xff]  }
  0x58   :  { %1326 = vmatprep.subr.bf16.mxu0 %v3524_v53  ;;  %1498 = vmatprep.subr.bf16.mxu1 %v3526_v54  ;;  %v3617_v53 = vld [vmem:[#allocation2 + $0x380] ss:$16 sps:$4 sm:$0xff]   ;;  %v3620_v54 = vld [vmem:[#allocation2 + $0x388] ss:$16 sps:$4 sm:$0xff]  }
  0x5b   :  { %1327 = vmatpush1.bf16.msra.mxu0 %v3528_v55  ;;  %1499 = vmatpush1.bf16.msra.mxu1 %v3529_v56  ;;  %v3625_v55 = vld [vmem:[#allocation2 + $0x3a4] ss:$16 sps:$4 sm:$0xff]   ;;  %v3628_v56 = vld [vmem:[#allocation2 + $0x3ac] ss:$16 sps:$4 sm:$0xff]  }
  0x5c   :  { %1328 = vmatprep.subr.bf16.mxu0 %v3530_v57  ;;  %1500 = vmatprep.subr.bf16.mxu1 %v3532_v58  ;;  %v3623_v57 = vld [vmem:[#allocation2 + $0x3a0] ss:$16 sps:$4 sm:$0xff]   ;;  %v3626_v58 = vld [vmem:[#allocation2 + $0x3a8] ss:$16 sps:$4 sm:$0xff]  }
  0x5f   :  { %1329 = vmatpush1.bf16.msra.mxu0 %v3534_v59  ;;  %1501 = vmatpush1.bf16.msra.mxu1 %v3535_v60  ;;  %v3631_v59 = vld [vmem:[#allocation2 + $0x3c4] ss:$16 sps:$4 sm:$0xff]   ;;  %v3634_v60 = vld [vmem:[#allocation2 + $0x3cc] ss:$16 sps:$4 sm:$0xff]  }
  0x60   :  { %1330 = vmatprep.subr.bf16.mxu0 %v3536_v61  ;;  %1502 = vmatprep.subr.bf16.mxu1 %v3538_v62  ;;  %v3629_v61 = vld [vmem:[#allocation2 + $0x3c0] ss:$16 sps:$4 sm:$0xff]   ;;  %v3632_v62 = vld [vmem:[#allocation2 + $0x3c8] ss:$16 sps:$4 sm:$0xff]  }
  0x63   :  { %1331 = vmatpush1.bf16.msra.mxu0 %v3540_v63  ;;  %1503 = vmatpush1.bf16.msra.mxu1 %v3541_v0  ;;  %v3637_v63 = vld [vmem:[#allocation2 + $0x3e4] ss:$16 sps:$4 sm:$0xff]   ;;  %v3640_v0 = vld [vmem:[#allocation2 + $0x3ec] ss:$16 sps:$4 sm:$0xff]  }
  0x64   :  { %1343 = vmatprep.subr.bf16.mxu0 %v3547_v1  ;;  %1515 = vmatprep.subr.bf16.mxu1 %v3550_v2  ;;  %v3635_v1 = vld [vmem:[#allocation2 + $0x3e0] ss:$16 sps:$4 sm:$0xff]   ;;  %v3638_v2 = vld [vmem:[#allocation2 + $0x3e8] ss:$16 sps:$4 sm:$0xff]  }
  0x66   :  { %1333 = vmatmul.mubr.bf16.vlgmr.msra.gmra.mrb[0].mxu0 %v3542_v3  ;;  %1505 = vmatmul.mubr.bf16.vlgmr.msra.gmra.mrb[0].mxu1 %v3542_v3  ;;  %v3646_v3 = vld [vmem:[#allocation2 + $0x404] ss:$16 sps:$4 sm:$0xff]  }
  0x67   :  { %1344 = vmatpush1.bf16.msra.mxu0 %v3545_v4  ;;  %1516 = vmatpush1.bf16.msra.mxu1 %v3548_v5  ;;  %v3649_v4 = vld [vmem:[#allocation2 + $0x40c] ss:$16 sps:$4 sm:$0xff]   ;;  %v3641_v5 = vld [vmem:[%s4249_s0 + $0x8] ss:$28 sps:$4 sm:$0xff]  }
  0x68   :  { %1345 = vmatprep.subr.bf16.mxu0 %v3553_v6  ;;  %1517 = vmatprep.subr.bf16.mxu1 %v3556_v7  ;;  %v3644_v6 = vld [vmem:[#allocation2 + $0x400] ss:$16 sps:$4 sm:$0xff]   ;;  %v3647_v7 = vld [vmem:[#allocation2 + $0x408] ss:$16 sps:$4 sm:$0xff]  }
  0x69   :  { %1375 = vmatprep.mubr.bf16.mxu0 %v3643_v30  ;;  %1547 = vmatprep.mubr.bf16.mxu1 %v3643_v30  ;;  %v3685_v30 = vld [vmem:[#allocation2 + $0x4cc] ss:$16 sps:$4 sm:$0xff]  }
  0x6b   :  { %1346 = vmatpush1.bf16.msra.mxu0 %v3551_v8  ;;  %1518 = vmatpush1.bf16.msra.mxu1 %v3554_v9  ;;  %v3652_v8 = vld [vmem:[#allocation2 + $0x424] ss:$16 sps:$4 sm:$0xff]   ;;  %v3655_v9 = vld [vmem:[#allocation2 + $0x42c] ss:$16 sps:$4 sm:$0xff]  }
  0x6c   :  { %1347 = vmatprep.subr.bf16.mxu0 %v3559_v10  ;;  %1519 = vmatprep.subr.bf16.mxu1 %v3562_v11  ;;  %v3650_v10 = vld [vmem:[#allocation2 + $0x420] ss:$16 sps:$4 sm:$0xff]   ;;  %v3653_v11 = vld [vmem:[#allocation2 + $0x428] ss:$16 sps:$4 sm:$0xff]  }
  0x6f   :  { %1348 = vmatpush1.bf16.msra.mxu0 %v3557_v12  ;;  %1520 = vmatpush1.bf16.msra.mxu1 %v3560_v13  ;;  %v3742_v12 = vld [vmem:[%s4249_s0 + $0x14] ss:$28 sps:$4 sm:$0xff]  }
  0x70   :  { %1349 = vmatprep.subr.bf16.mxu0 %v3565_v14  ;;  %1521 = vmatprep.subr.bf16.mxu1 %v3568_v15  ;;  %v3658_v13 = vld [vmem:[#allocation2 + $0x444] ss:$16 sps:$4 sm:$0xff]   ;;  %v3661_v14 = vld [vmem:[#allocation2 + $0x44c] ss:$16 sps:$4 sm:$0xff]   ;;  %v3656_v15 = vld [vmem:[#allocation2 + $0x440] ss:$16 sps:$4 sm:$0xff]  }
  0x73   :  { %1350 = vmatpush1.bf16.msra.mxu0 %v3563_v16  ;;  %1522 = vmatpush1.bf16.msra.mxu1 %v3566_v17  ;;  %v3659_v16 = vld [vmem:[#allocation2 + $0x448] ss:$16 sps:$4 sm:$0xff]   ;;  %v3664_v17 = vld [vmem:[#allocation2 + $0x464] ss:$16 sps:$4 sm:$0xff]  }
  0x74   :  { %1351 = vmatprep.subr.bf16.mxu0 %v3571_v18  ;;  %1523 = vmatprep.subr.bf16.mxu1 %v3574_v19  ;;  %v3667_v18 = vld [vmem:[#allocation2 + $0x46c] ss:$16 sps:$4 sm:$0xff]   ;;  %v3662_v19 = vld [vmem:[#allocation2 + $0x460] ss:$16 sps:$4 sm:$0xff]  }
  0x77   :  { %1352 = vmatpush1.bf16.msra.mxu0 %v3569_v20  ;;  %1524 = vmatpush1.bf16.msra.mxu1 %v3572_v21  ;;  %v3665_v20 = vld [vmem:[#allocation2 + $0x468] ss:$16 sps:$4 sm:$0xff]   ;;  %v3670_v21 = vld [vmem:[#allocation2 + $0x484] ss:$16 sps:$4 sm:$0xff]  }
  0x78   :  { %1353 = vmatprep.subr.bf16.mxu0 %v3577_v22  ;;  %1525 = vmatprep.subr.bf16.mxu1 %v3580_v23  ;;  %v3673_v22 = vld [vmem:[#allocation2 + $0x48c] ss:$16 sps:$4 sm:$0xff]   ;;  %v3668_v23 = vld [vmem:[#allocation2 + $0x480] ss:$16 sps:$4 sm:$0xff]  }
  0x7b   :  { %1354 = vmatpush1.bf16.msra.mxu0 %v3575_v24  ;;  %1526 = vmatpush1.bf16.msra.mxu1 %v3578_v25  ;;  %v3671_v24 = vld [vmem:[#allocation2 + $0x488] ss:$16 sps:$4 sm:$0xff]   ;;  %v3676_v25 = vld [vmem:[#allocation2 + $0x4a4] ss:$16 sps:$4 sm:$0xff]  }
  0x7c   :  { %1355 = vmatprep.subr.bf16.mxu0 %v3583_v26  ;;  %1527 = vmatprep.subr.bf16.mxu1 %v3586_v27  ;;  %v3679_v26 = vld [vmem:[#allocation2 + $0x4ac] ss:$16 sps:$4 sm:$0xff]   ;;  %v3674_v27 = vld [vmem:[#allocation2 + $0x4a0] ss:$16 sps:$4 sm:$0xff]  }
  0x7f   :  { %1356 = vmatpush1.bf16.msra.mxu0 %v3581_v28  ;;  %1528 = vmatpush1.bf16.msra.mxu1 %v3584_v29  ;;  %v3677_v28 = vld [vmem:[#allocation2 + $0x4a8] ss:$16 sps:$4 sm:$0xff]   ;;  %v3682_v29 = vld [vmem:[#allocation2 + $0x4c4] ss:$16 sps:$4 sm:$0xff]  }
  0x80   :  { %1357 = vmatprep.subr.bf16.mxu0 %v3589_v31  ;;  %1529 = vmatprep.subr.bf16.mxu1 %v3592_v32  ;;  %v3680_v31 = vld [vmem:[#allocation2 + $0x4c0] ss:$16 sps:$4 sm:$0xff]   ;;  %v3683_v32 = vld [vmem:[#allocation2 + $0x4c8] ss:$16 sps:$4 sm:$0xff]  }
  0x83   :  { %1358 = vmatpush1.bf16.msra.mxu0 %v3587_v33  ;;  %1530 = vmatpush1.bf16.msra.mxu1 %v3590_v34  ;;  %v3688_v33 = vld [vmem:[#allocation2 + $0x4e4] ss:$16 sps:$4 sm:$0xff]   ;;  %v3691_v34 = vld [vmem:[#allocation2 + $0x4ec] ss:$16 sps:$4 sm:$0xff]  }
  0x84   :  { %1359 = vmatprep.subr.bf16.mxu0 %v3595_v35  ;;  %1531 = vmatprep.subr.bf16.mxu1 %v3598_v36  ;;  %v3686_v35 = vld [vmem:[#allocation2 + $0x4e0] ss:$16 sps:$4 sm:$0xff]   ;;  %v3689_v36 = vld [vmem:[#allocation2 + $0x4e8] ss:$16 sps:$4 sm:$0xff]  }
  0x87   :  { %1360 = vmatpush1.bf16.msra.mxu0 %v3593_v37  ;;  %1532 = vmatpush1.bf16.msra.mxu1 %v3596_v38  ;;  %v3694_v37 = vld [vmem:[#allocation2 + $0x504] ss:$16 sps:$4 sm:$0xff]   ;;  %v3697_v38 = vld [vmem:[#allocation2 + $0x50c] ss:$16 sps:$4 sm:$0xff]  }
  0x88   :  { %1361 = vmatprep.subr.bf16.mxu0 %v3601_v39  ;;  %1533 = vmatprep.subr.bf16.mxu1 %v3604_v40  ;;  %v3692_v39 = vld [vmem:[#allocation2 + $0x500] ss:$16 sps:$4 sm:$0xff]   ;;  %v3695_v40 = vld [vmem:[#allocation2 + $0x508] ss:$16 sps:$4 sm:$0xff]  }
  0x8b   :  { %1362 = vmatpush1.bf16.msra.mxu0 %v3599_v41  ;;  %1534 = vmatpush1.bf16.msra.mxu1 %v3602_v42  ;;  %v3700_v41 = vld [vmem:[#allocation2 + $0x524] ss:$16 sps:$4 sm:$0xff]   ;;  %v3703_v42 = vld [vmem:[#allocation2 + $0x52c] ss:$16 sps:$4 sm:$0xff]  }
  0x8c   :  { %1363 = vmatprep.subr.bf16.mxu0 %v3607_v43  ;;  %1535 = vmatprep.subr.bf16.mxu1 %v3610_v44  ;;  %v3698_v43 = vld [vmem:[#allocation2 + $0x520] ss:$16 sps:$4 sm:$0xff]   ;;  %v3701_v44 = vld [vmem:[#allocation2 + $0x528] ss:$16 sps:$4 sm:$0xff]  }
  0x8f   :  { %1364 = vmatpush1.bf16.msra.mxu0 %v3605_v45  ;;  %1536 = vmatpush1.bf16.msra.mxu1 %v3608_v46  ;;  %v3706_v45 = vld [vmem:[#allocation2 + $0x544] ss:$16 sps:$4 sm:$0xff]   ;;  %v3709_v46 = vld [vmem:[#allocation2 + $0x54c] ss:$16 sps:$4 sm:$0xff]  }
  0x90   :  { %1365 = vmatprep.subr.bf16.mxu0 %v3613_v47  ;;  %1537 = vmatprep.subr.bf16.mxu1 %v3616_v48  ;;  %v3704_v47 = vld [vmem:[#allocation2 + $0x540] ss:$16 sps:$4 sm:$0xff]   ;;  %v3707_v48 = vld [vmem:[#allocation2 + $0x548] ss:$16 sps:$4 sm:$0xff]  }
  0x93   :  { %1366 = vmatpush1.bf16.msra.mxu0 %v3611_v49  ;;  %1538 = vmatpush1.bf16.msra.mxu1 %v3614_v50  ;;  %v3712_v49 = vld [vmem:[#allocation2 + $0x564] ss:$16 sps:$4 sm:$0xff]   ;;  %v3715_v50 = vld [vmem:[#allocation2 + $0x56c] ss:$16 sps:$4 sm:$0xff]  }
  0x94   :  { %1367 = vmatprep.subr.bf16.mxu0 %v3619_v51  ;;  %1539 = vmatprep.subr.bf16.mxu1 %v3622_v52  ;;  %v3710_v51 = vld [vmem:[#allocation2 + $0x560] ss:$16 sps:$4 sm:$0xff]   ;;  %v3713_v52 = vld [vmem:[#allocation2 + $0x568] ss:$16 sps:$4 sm:$0xff]  }
  0x97   :  { %1368 = vmatpush1.bf16.msra.mxu0 %v3617_v53  ;;  %1540 = vmatpush1.bf16.msra.mxu1 %v3620_v54  ;;  %v3718_v53 = vld [vmem:[#allocation2 + $0x584] ss:$16 sps:$4 sm:$0xff]   ;;  %v3721_v54 = vld [vmem:[#allocation2 + $0x58c] ss:$16 sps:$4 sm:$0xff]  }
  0x98   :  { %1369 = vmatprep.subr.bf16.mxu0 %v3625_v55  ;;  %1541 = vmatprep.subr.bf16.mxu1 %v3628_v56  ;;  %v3716_v55 = vld [vmem:[#allocation2 + $0x580] ss:$16 sps:$4 sm:$0xff]   ;;  %v3719_v56 = vld [vmem:[#allocation2 + $0x588] ss:$16 sps:$4 sm:$0xff]  }
  0x9b   :  { %1370 = vmatpush1.bf16.msra.mxu0 %v3623_v57  ;;  %1542 = vmatpush1.bf16.msra.mxu1 %v3626_v58  ;;  %v3724_v57 = vld [vmem:[#allocation2 + $0x5a4] ss:$16 sps:$4 sm:$0xff]   ;;  %v3727_v58 = vld [vmem:[#allocation2 + $0x5ac] ss:$16 sps:$4 sm:$0xff]  }
  0x9c   :  { %1371 = vmatprep.subr.bf16.mxu0 %v3631_v59  ;;  %1543 = vmatprep.subr.bf16.mxu1 %v3634_v60  ;;  %v3722_v59 = vld [vmem:[#allocation2 + $0x5a0] ss:$16 sps:$4 sm:$0xff]   ;;  %v3725_v60 = vld [vmem:[#allocation2 + $0x5a8] ss:$16 sps:$4 sm:$0xff]  }
  0x9f   :  { %1372 = vmatpush1.bf16.msra.mxu0 %v3629_v61  ;;  %1544 = vmatpush1.bf16.msra.mxu1 %v3632_v62  ;;  %v3730_v61 = vld [vmem:[#allocation2 + $0x5c4] ss:$16 sps:$4 sm:$0xff]   ;;  %v3733_v62 = vld [vmem:[#allocation2 + $0x5cc] ss:$16 sps:$4 sm:$0xff]  }
  0xa0   :  { %1373 = vmatprep.subr.bf16.mxu0 %v3637_v63  ;;  %1545 = vmatprep.subr.bf16.mxu1 %v3640_v0  ;;  %v3728_v63 = vld [vmem:[#allocation2 + $0x5c0] ss:$16 sps:$4 sm:$0xff]   ;;  %v3731_v0 = vld [vmem:[#allocation2 + $0x5c8] ss:$16 sps:$4 sm:$0xff]  }
  0xa3   :  { %1374 = vmatpush1.bf16.msra.mxu0 %v3635_v1  ;;  %1546 = vmatpush1.bf16.msra.mxu1 %v3638_v2  ;;  %v3736_v1 = vld [vmem:[#allocation2 + $0x5e4] ss:$16 sps:$4 sm:$0xff]   ;;  %v3739_v2 = vld [vmem:[#allocation2 + $0x5ec] ss:$16 sps:$4 sm:$0xff]  }
  0xa4   :  { %1386 = vmatprep.subr.bf16.mxu0 %v3646_v3  ;;  %1558 = vmatprep.subr.bf16.mxu1 %v3649_v4  ;;  %v3734_v3 = vld [vmem:[#allocation2 + $0x5e0] ss:$16 sps:$4 sm:$0xff]   ;;  %v3737_v4 = vld [vmem:[#allocation2 + $0x5e8] ss:$16 sps:$4 sm:$0xff]  }
  0xa6   :  { %1376 = vmatmul.mubr.bf16.vlgmr.msra.gmra.mrb[0].mxu0 %v3641_v5  ;;  %1548 = vmatmul.mubr.bf16.vlgmr.msra.gmra.mrb[0].mxu1 %v3641_v5  ;;  %v3745_v5 = vld [vmem:[#allocation2 + $0x604] ss:$16 sps:$4 sm:$0xff]  }
  0xa7   :  { %1387 = vmatpush1.bf16.msra.mxu0 %v3644_v6  ;;  %1559 = vmatpush1.bf16.msra.mxu1 %v3647_v7  ;;  %v3748_v6 = vld [vmem:[#allocation2 + $0x60c] ss:$16 sps:$4 sm:$0xff]  }
  0xa8   :  { %1388 = vmatprep.subr.bf16.mxu0 %v3652_v8  ;;  %1560 = vmatprep.subr.bf16.mxu1 %v3655_v9  ;;  %v3740_v7 = vld [vmem:[%s4249_s0 + $0x10] ss:$28 sps:$4 sm:$0xff]   ;;  %v3746_v9 = vld [vmem:[#allocation2 + $0x608] ss:$16 sps:$4 sm:$0xff]  }
  0xa9   :  { %1418 = vmatprep.mubr.bf16.mxu0 %v3742_v12  ;;  %1590 = vmatprep.mubr.bf16.mxu1 %v3742_v12  ;;  %v3743_v8 = vld [vmem:[#allocation2 + $0x600] ss:$16 sps:$4 sm:$0xff]   ;;  %v4026_v12 = vmov 0  }
  0xab   :  { %1389 = vmatpush1.bf16.msra.mxu0 %v3650_v10  ;;  %1561 = vmatpush1.bf16.msra.mxu1 %v3653_v11  ;;  %v3752_v10 = vld [vmem:[#allocation4 + $0x4] ss:$16 sps:$4 sm:$0xff]   ;;  %v3755_v11 = vld [vmem:[#allocation4 + $0xc] ss:$16 sps:$4 sm:$0xff]  }
  0xac   :  { %1390 = vmatprep.subr.bf16.mxu0 %v3658_v13  ;;  %1562 = vmatprep.subr.bf16.mxu1 %v3661_v14  ;;  %v3749_v13 = vld [vmem:[%s4249_s0 + $0x18] ss:$28 sps:$4 sm:$0xff]   ;;  %v3750_v14 = vld [vmem:[#allocation4] ss:$16 sps:$4 sm:$0xff]  }
  0xaf   :  { %1391 = vmatpush1.bf16.msra.mxu0 %v3656_v15  ;;  %1563 = vmatpush1.bf16.msra.mxu1 %v3659_v16  ;;  %v3753_v15 = vld [vmem:[#allocation4 + $0x8] ss:$16 sps:$4 sm:$0xff]   ;;  %v3758_v16 = vld [vmem:[#allocation4 + $0x24] ss:$16 sps:$4 sm:$0xff]  }
  0xb0   :  { %1392 = vmatprep.subr.bf16.mxu0 %v3664_v17  ;;  %1564 = vmatprep.subr.bf16.mxu1 %v3667_v18  ;;  %v3761_v17 = vld [vmem:[#allocation4 + $0x2c] ss:$16 sps:$4 sm:$0xff]   ;;  %v3756_v18 = vld [vmem:[#allocation4 + $0x20] ss:$16 sps:$4 sm:$0xff]  }
  0xb3   :  { %1393 = vmatpush1.bf16.msra.mxu0 %v3662_v19  ;;  %1565 = vmatpush1.bf16.msra.mxu1 %v3665_v20  ;;  %v3759_v19 = vld [vmem:[#allocation4 + $0x28] ss:$16 sps:$4 sm:$0xff]   ;;  %v3764_v20 = vld [vmem:[#allocation4 + $0x44] ss:$16 sps:$4 sm:$0xff]  }
  0xb4   :  { %1394 = vmatprep.subr.bf16.mxu0 %v3670_v21  ;;  %1566 = vmatprep.subr.bf16.mxu1 %v3673_v22  ;;  %v3767_v21 = vld [vmem:[#allocation4 + $0x4c] ss:$16 sps:$4 sm:$0xff]   ;;  %v3762_v22 = vld [vmem:[#allocation4 + $0x40] ss:$16 sps:$4 sm:$0xff]  }
  0xb7   :  { %1395 = vmatpush1.bf16.msra.mxu0 %v3668_v23  ;;  %1567 = vmatpush1.bf16.msra.mxu1 %v3671_v24  ;;  %v3765_v23 = vld [vmem:[#allocation4 + $0x48] ss:$16 sps:$4 sm:$0xff]   ;;  %v3770_v24 = vld [vmem:[#allocation4 + $0x64] ss:$16 sps:$4 sm:$0xff]  }
  0xb8   :  { %1396 = vmatprep.subr.bf16.mxu0 %v3676_v25  ;;  %1568 = vmatprep.subr.bf16.mxu1 %v3679_v26  ;;  %v3773_v25 = vld [vmem:[#allocation4 + $0x6c] ss:$16 sps:$4 sm:$0xff]   ;;  %v3768_v26 = vld [vmem:[#allocation4 + $0x60] ss:$16 sps:$4 sm:$0xff]  }
  0xbb   :  { %1397 = vmatpush1.bf16.msra.mxu0 %v3674_v27  ;;  %1569 = vmatpush1.bf16.msra.mxu1 %v3677_v28  ;;  %v3771_v27 = vld [vmem:[#allocation4 + $0x68] ss:$16 sps:$4 sm:$0xff]   ;;  %v3776_v28 = vld [vmem:[#allocation4 + $0x84] ss:$16 sps:$4 sm:$0xff]  }
  0xbc   :  { %1398 = vmatprep.subr.bf16.mxu0 %v3682_v29  ;;  %1570 = vmatprep.subr.bf16.mxu1 %v3685_v30  ;;  %v3779_v29 = vld [vmem:[#allocation4 + $0x8c] ss:$16 sps:$4 sm:$0xff]   ;;  %v3774_v30 = vld [vmem:[#allocation4 + $0x80] ss:$16 sps:$4 sm:$0xff]  }
  0xbf   :  { %1399 = vmatpush1.bf16.msra.mxu0 %v3680_v31  ;;  %1571 = vmatpush1.bf16.msra.mxu1 %v3683_v32  ;;  %v3777_v31 = vld [vmem:[#allocation4 + $0x88] ss:$16 sps:$4 sm:$0xff]   ;;  %v3782_v32 = vld [vmem:[#allocation4 + $0xa4] ss:$16 sps:$4 sm:$0xff]  }
  0xc0   :  { %1400 = vmatprep.subr.bf16.mxu0 %v3688_v33  ;;  %1572 = vmatprep.subr.bf16.mxu1 %v3691_v34  ;;  %v3785_v33 = vld [vmem:[#allocation4 + $0xac] ss:$16 sps:$4 sm:$0xff]   ;;  %v3780_v34 = vld [vmem:[#allocation4 + $0xa0] ss:$16 sps:$4 sm:$0xff]  }
  0xc3   :  { %1401 = vmatpush1.bf16.msra.mxu0 %v3686_v35  ;;  %1573 = vmatpush1.bf16.msra.mxu1 %v3689_v36  ;;  %v3783_v35 = vld [vmem:[#allocation4 + $0xa8] ss:$16 sps:$4 sm:$0xff]   ;;  %v3788_v36 = vld [vmem:[#allocation4 + $0xc4] ss:$16 sps:$4 sm:$0xff]  }
  0xc4   :  { %1402 = vmatprep.subr.bf16.mxu0 %v3694_v37  ;;  %1574 = vmatprep.subr.bf16.mxu1 %v3697_v38  ;;  %v3791_v37 = vld [vmem:[#allocation4 + $0xcc] ss:$16 sps:$4 sm:$0xff]   ;;  %v3786_v38 = vld [vmem:[#allocation4 + $0xc0] ss:$16 sps:$4 sm:$0xff]  }
  0xc7   :  { %1403 = vmatpush1.bf16.msra.mxu0 %v3692_v39  ;;  %1575 = vmatpush1.bf16.msra.mxu1 %v3695_v40  ;;  %v3789_v39 = vld [vmem:[#allocation4 + $0xc8] ss:$16 sps:$4 sm:$0xff]   ;;  %v3794_v40 = vld [vmem:[#allocation4 + $0xe4] ss:$16 sps:$4 sm:$0xff]  }
  0xc8   :  { %1404 = vmatprep.subr.bf16.mxu0 %v3700_v41  ;;  %1576 = vmatprep.subr.bf16.mxu1 %v3703_v42  ;;  %v3797_v41 = vld [vmem:[#allocation4 + $0xec] ss:$16 sps:$4 sm:$0xff]   ;;  %v3792_v42 = vld [vmem:[#allocation4 + $0xe0] ss:$16 sps:$4 sm:$0xff]  }
  0xcb   :  { %1405 = vmatpush1.bf16.msra.mxu0 %v3698_v43  ;;  %1577 = vmatpush1.bf16.msra.mxu1 %v3701_v44  ;;  %v3795_v43 = vld [vmem:[#allocation4 + $0xe8] ss:$16 sps:$4 sm:$0xff]   ;;  %v3800_v44 = vld [vmem:[#allocation4 + $0x104] ss:$16 sps:$4 sm:$0xff]  }
  0xcc   :  { %1406 = vmatprep.subr.bf16.mxu0 %v3706_v45  ;;  %1578 = vmatprep.subr.bf16.mxu1 %v3709_v46  ;;  %v3803_v45 = vld [vmem:[#allocation4 + $0x10c] ss:$16 sps:$4 sm:$0xff]   ;;  %v3798_v46 = vld [vmem:[#allocation4 + $0x100] ss:$16 sps:$4 sm:$0xff]  }
  0xcf   :  { %1407 = vmatpush1.bf16.msra.mxu0 %v3704_v47  ;;  %1579 = vmatpush1.bf16.msra.mxu1 %v3707_v48  ;;  %v3801_v47 = vld [vmem:[#allocation4 + $0x108] ss:$16 sps:$4 sm:$0xff]   ;;  %v3806_v48 = vld [vmem:[#allocation4 + $0x124] ss:$16 sps:$4 sm:$0xff]  }
  0xd0   :  { %1408 = vmatprep.subr.bf16.mxu0 %v3712_v49  ;;  %1580 = vmatprep.subr.bf16.mxu1 %v3715_v50  ;;  %v3809_v49 = vld [vmem:[#allocation4 + $0x12c] ss:$16 sps:$4 sm:$0xff]   ;;  %v3804_v50 = vld [vmem:[#allocation4 + $0x120] ss:$16 sps:$4 sm:$0xff]  }
  0xd3   :  { %1409 = vmatpush1.bf16.msra.mxu0 %v3710_v51  ;;  %1581 = vmatpush1.bf16.msra.mxu1 %v3713_v52  ;;  %v3807_v51 = vld [vmem:[#allocation4 + $0x128] ss:$16 sps:$4 sm:$0xff]   ;;  %v3812_v52 = vld [vmem:[#allocation4 + $0x144] ss:$16 sps:$4 sm:$0xff]  }
  0xd4   :  { %1410 = vmatprep.subr.bf16.mxu0 %v3718_v53  ;;  %1582 = vmatprep.subr.bf16.mxu1 %v3721_v54  ;;  %v3815_v53 = vld [vmem:[#allocation4 + $0x14c] ss:$16 sps:$4 sm:$0xff]   ;;  %v3810_v54 = vld [vmem:[#allocation4 + $0x140] ss:$16 sps:$4 sm:$0xff]  }
  0xd7   :  { %1411 = vmatpush1.bf16.msra.mxu0 %v3716_v55  ;;  %1583 = vmatpush1.bf16.msra.mxu1 %v3719_v56  ;;  %v3813_v55 = vld [vmem:[#allocation4 + $0x148] ss:$16 sps:$4 sm:$0xff]   ;;  %v3818_v56 = vld [vmem:[#allocation4 + $0x164] ss:$16 sps:$4 sm:$0xff]  }
  0xd8   :  { %1412 = vmatprep.subr.bf16.mxu0 %v3724_v57  ;;  %1584 = vmatprep.subr.bf16.mxu1 %v3727_v58  ;;  %v3821_v57 = vld [vmem:[#allocation4 + $0x16c] ss:$16 sps:$4 sm:$0xff]   ;;  %v3816_v58 = vld [vmem:[#allocation4 + $0x160] ss:$16 sps:$4 sm:$0xff]  }
  0xdb   :  { %1413 = vmatpush1.bf16.msra.mxu0 %v3722_v59  ;;  %1585 = vmatpush1.bf16.msra.mxu1 %v3725_v60  ;;  %v3819_v59 = vld [vmem:[#allocation4 + $0x168] ss:$16 sps:$4 sm:$0xff]   ;;  %v3824_v60 = vld [vmem:[#allocation4 + $0x184] ss:$16 sps:$4 sm:$0xff]  }
  0xdc   :  { %1414 = vmatprep.subr.bf16.mxu0 %v3730_v61  ;;  %1586 = vmatprep.subr.bf16.mxu1 %v3733_v62  ;;  %v3827_v61 = vld [vmem:[#allocation4 + $0x18c] ss:$16 sps:$4 sm:$0xff]   ;;  %v3822_v62 = vld [vmem:[#allocation4 + $0x180] ss:$16 sps:$4 sm:$0xff]  }
  0xdf   :  { %1415 = vmatpush1.bf16.msra.mxu0 %v3728_v63  ;;  %1587 = vmatpush1.bf16.msra.mxu1 %v3731_v0  ;;  %v3825_v63 = vld [vmem:[#allocation4 + $0x188] ss:$16 sps:$4 sm:$0xff]   ;;  %v3830_v0 = vld [vmem:[#allocation4 + $0x1a4] ss:$16 sps:$4 sm:$0xff]  }
  0xe0   :  { %1416 = vmatprep.subr.bf16.mxu0 %v3736_v1  ;;  %1588 = vmatprep.subr.bf16.mxu1 %v3739_v2  ;;  %v3833_v1 = vld [vmem:[#allocation4 + $0x1ac] ss:$16 sps:$4 sm:$0xff]   ;;  %v3828_v2 = vld [vmem:[#allocation4 + $0x1a0] ss:$16 sps:$4 sm:$0xff]  }
  0xe3   :  { %1417 = vmatpush1.bf16.msra.mxu0 %v3734_v3  ;;  %1589 = vmatpush1.bf16.msra.mxu1 %v3737_v4  ;;  %v3831_v3 = vld [vmem:[#allocation4 + $0x1a8] ss:$16 sps:$4 sm:$0xff]   ;;  %v3836_v4 = vld [vmem:[#allocation4 + $0x1c4] ss:$16 sps:$4 sm:$0xff]  }
  0xe4   :  { %1429 = vmatprep.subr.bf16.mxu0 %v3745_v5  ;;  %1601 = vmatprep.subr.bf16.mxu1 %v3748_v6  ;;  %v3839_v5 = vld [vmem:[#allocation4 + $0x1cc] ss:$16 sps:$4 sm:$0xff]   ;;  %v3834_v6 = vld [vmem:[#allocation4 + $0x1c0] ss:$16 sps:$4 sm:$0xff]  }
  0xe6   :  { %1419 = vmatmul.mubr.bf16.vlgmr.msra.gmra.mrb[0].mxu0 %v3740_v7  ;;  %1591 = vmatmul.mubr.bf16.vlgmr.msra.gmra.mrb[0].mxu1 %v3740_v7  ;;  %v3837_v7 = vld [vmem:[#allocation4 + $0x1c8] ss:$16 sps:$4 sm:$0xff]  }
  0xe7   :  { %1430 = vmatpush1.bf16.msra.mxu0 %v3743_v8  ;;  %1602 = vmatpush1.bf16.msra.mxu1 %v3746_v9  ;;  %v3842_v8 = vld [vmem:[#allocation4 + $0x1e4] ss:$16 sps:$4 sm:$0xff]   ;;  %v3845_v9 = vld [vmem:[#allocation4 + $0x1ec] ss:$16 sps:$4 sm:$0xff]  }
  0xe8   :  { %1461 = vmatprep.mubr.bf16.mxu0 %v4026_v12  ;;  %1633 = vmatprep.mubr.bf16.mxu1 %v4026_v12  ;;  %v3848_v12 = vld [vmem:[#allocation4 + $0x204] ss:$16 sps:$4 sm:$0xff]  }
  0xe9   :  { %2446 = vmatprep.subr.bf16.mxu0 %v3752_v10  ;;  %2532 = vmatprep.subr.bf16.mxu1 %v3755_v11  ;;  %v3840_v10 = vld [vmem:[#allocation4 + $0x1e0] ss:$16 sps:$4 sm:$0xff]   ;;  %v3843_v11 = vld [vmem:[#allocation4 + $0x1e8] ss:$16 sps:$4 sm:$0xff]  }
  0xf2   :  { %3186 = vmatmul.mubr.msk.bf16.vlgmr.msra.gmra.mrb[0].mxu0 %vm1296_vm0, %v3749_v13  ;;  %3187 = vmatmul.mubr.msk.bf16.vlgmr.msra.gmra.mrb[0].mxu1 %vm1296_vm0, %v3749_v13  ;;  %v3851_v13 = vld [vmem:[#allocation4 + $0x20c] ss:$16 sps:$4 sm:$0xff]  }
  0xf3   :  { %2447 = vmatpush1.bf16.msra.mxu0 %v3750_v14  ;;  %2533 = vmatpush1.bf16.msra.mxu1 %v3753_v15  ;;  %v261_v14 = vlaneseq }
  0xf4   :  { %2448 = vmatprep.subr.bf16.mxu0 %v3758_v16  ;;  %2534 = vmatprep.subr.bf16.mxu1 %v3761_v17 }
  0xf5   :  { %v4112_v15 = vshrl.u32 %v261_v14, 7  ;;  %v3885_v14 = vld [vmem:[#allocation4 + $0x2c8] ss:$16 sps:$4 sm:$0xff]  }
  0xf7   :  { %2449 = vmatpush1.bf16.msra.mxu0 %v3756_v18  ;;  %2535 = vmatpush1.bf16.msra.mxu1 %v3759_v19  ;;  %v263_v16 = vsub.s32 0, %v4112_v15  ;;  %v271_v17 = vsub.s32 2, %v4112_v15  ;;  %v259_v18 = vld [vmem:[%s4251_s2] sm:$0xf]  ;;  %v267_v19 = vsub.s32 1, %v4112_v15 }
  0xf8   :  { %2450 = vmatprep.subr.bf16.mxu0 %v3764_v20  ;;  %2536 = vmatprep.subr.bf16.mxu1 %v3767_v21  ;;  %v275_v20 = vsub.s32 3, %v4112_v15 }
  0xf9   :  { %v264_v21 = vrot.slane %v259_v18, %v263_v16 }
  0xfb   :  { %2451 = vmatpush1.bf16.msra.mxu0 %v3762_v22  ;;  %2537 = vmatpush1.bf16.msra.mxu1 %v3765_v23  ;;  %v272_v22 = vrot.slane %v259_v18, %v271_v17  ;;  %v268_v23 = vrot.slane %v259_v18, %v267_v19 }
  0xfc   :  { %2452 = vmatprep.subr.bf16.mxu0 %v3770_v24  ;;  %2538 = vmatprep.subr.bf16.mxu1 %v3773_v25  ;;  %v276_v24 = vrot.slane %v259_v18, %v275_v20  ;;  %v3890_v18 = vld [vmem:[#allocation4 + $0x2e4] ss:$16 sps:$4 sm:$0xff]  }
  0xff   :  { %2453 = vmatpush1.bf16.msra.mxu0 %v3768_v26  ;;  %2539 = vmatpush1.bf16.msra.mxu1 %v3771_v27 }
 0x100   :  { %2454 = vmatprep.subr.bf16.mxu0 %v3776_v28  ;;  %2540 = vmatprep.subr.bf16.mxu1 %v3779_v29 }
 0x103   :  { %2455 = vmatpush1.bf16.msra.mxu0 %v3774_v30  ;;  %2541 = vmatpush1.bf16.msra.mxu1 %v3777_v31 }
 0x104   :  { %2456 = vmatprep.subr.bf16.mxu0 %v3782_v32  ;;  %2542 = vmatprep.subr.bf16.mxu1 %v3785_v33 }
 0x107   :  { %2457 = vmatpush1.bf16.msra.mxu0 %v3780_v34  ;;  %2543 = vmatpush1.bf16.msra.mxu1 %v3783_v35 }
 0x108   :  { %2458 = vmatprep.subr.bf16.mxu0 %v3788_v36  ;;  %2544 = vmatprep.subr.bf16.mxu1 %v3791_v37 }
 0x10b   :  { %2459 = vmatpush1.bf16.msra.mxu0 %v3786_v38  ;;  %2545 = vmatpush1.bf16.msra.mxu1 %v3789_v39 }
 0x10c   :  { %2460 = vmatprep.subr.bf16.mxu0 %v3794_v40  ;;  %2546 = vmatprep.subr.bf16.mxu1 %v3797_v41 }
 0x10f   :  { %2461 = vmatpush1.bf16.msra.mxu0 %v3792_v42  ;;  %2547 = vmatpush1.bf16.msra.mxu1 %v3795_v43 }
 0x110   :  { %2462 = vmatprep.subr.bf16.mxu0 %v3800_v44  ;;  %2548 = vmatprep.subr.bf16.mxu1 %v3803_v45 }
 0x113   :  { %2463 = vmatpush1.bf16.msra.mxu0 %v3798_v46  ;;  %2549 = vmatpush1.bf16.msra.mxu1 %v3801_v47 }
 0x114   :  { %2464 = vmatprep.subr.bf16.mxu0 %v3806_v48  ;;  %2550 = vmatprep.subr.bf16.mxu1 %v3809_v49 }
 0x117   :  { %2465 = vmatpush1.bf16.msra.mxu0 %v3804_v50  ;;  %2551 = vmatpush1.bf16.msra.mxu1 %v3807_v51 }
 0x118   :  { %2466 = vmatprep.subr.bf16.mxu0 %v3812_v52  ;;  %2552 = vmatprep.subr.bf16.mxu1 %v3815_v53  ;;  %v3846_v53 = vld [vmem:[#allocation4 + $0x200] ss:$16 sps:$4 sm:$0xff]  }
 0x11b   :  { %2467 = vmatpush1.bf16.msra.mxu0 %v3810_v54  ;;  %2553 = vmatpush1.bf16.msra.mxu1 %v3813_v55  ;;  %v3849_v54 = vld [vmem:[#allocation4 + $0x208] ss:$16 sps:$4 sm:$0xff]   ;;  %v3854_v55 = vld [vmem:[#allocation4 + $0x224] ss:$16 sps:$4 sm:$0xff]  }
 0x11c   :  { %2468 = vmatprep.subr.bf16.mxu0 %v3818_v56  ;;  %2554 = vmatprep.subr.bf16.mxu1 %v3821_v57  ;;  %v3857_v56 = vld [vmem:[#allocation4 + $0x22c] ss:$16 sps:$4 sm:$0xff]   ;;  %v3852_v57 = vld [vmem:[#allocation4 + $0x220] ss:$16 sps:$4 sm:$0xff]  }
 0x11f   :  { %2469 = vmatpush1.bf16.msra.mxu0 %v3816_v58  ;;  %2555 = vmatpush1.bf16.msra.mxu1 %v3819_v59  ;;  %v3855_v58 = vld [vmem:[#allocation4 + $0x228] ss:$16 sps:$4 sm:$0xff]   ;;  %v3860_v59 = vld [vmem:[#allocation4 + $0x244] ss:$16 sps:$4 sm:$0xff]  }
 0x120   :  { %2470 = vmatprep.subr.bf16.mxu0 %v3824_v60  ;;  %2556 = vmatprep.subr.bf16.mxu1 %v3827_v61  ;;  %v3863_v60 = vld [vmem:[#allocation4 + $0x24c] ss:$16 sps:$4 sm:$0xff]   ;;  %v3858_v61 = vld [vmem:[#allocation4 + $0x240] ss:$16 sps:$4 sm:$0xff]  }
 0x123   :  { %2471 = vmatpush1.bf16.msra.mxu0 %v3822_v62  ;;  %2557 = vmatpush1.bf16.msra.mxu1 %v3825_v63  ;;  %v3861_v62 = vld [vmem:[#allocation4 + $0x248] ss:$16 sps:$4 sm:$0xff]   ;;  %v3866_v63 = vld [vmem:[#allocation4 + $0x264] ss:$16 sps:$4 sm:$0xff]  }
 0x124   :  { %2472 = vmatprep.subr.bf16.mxu0 %v3830_v0  ;;  %2558 = vmatprep.subr.bf16.mxu1 %v3833_v1  ;;  %v3869_v0 = vld [vmem:[#allocation4 + $0x26c] ss:$16 sps:$4 sm:$0xff]   ;;  %v3864_v1 = vld [vmem:[#allocation4 + $0x260] ss:$16 sps:$4 sm:$0xff]  }
 0x127   :  { %2473 = vmatpush1.bf16.msra.mxu0 %v3828_v2  ;;  %2559 = vmatpush1.bf16.msra.mxu1 %v3831_v3  ;;  %v3867_v2 = vld [vmem:[#allocation4 + $0x268] ss:$16 sps:$4 sm:$0xff]   ;;  %v3872_v3 = vld [vmem:[#allocation4 + $0x284] ss:$16 sps:$4 sm:$0xff]  }
 0x128   :  { %2474 = vmatprep.subr.bf16.mxu0 %v3836_v4  ;;  %2560 = vmatprep.subr.bf16.mxu1 %v3839_v5  ;;  %v3875_v4 = vld [vmem:[#allocation4 + $0x28c] ss:$16 sps:$4 sm:$0xff]   ;;  %v3870_v5 = vld [vmem:[#allocation4 + $0x280] ss:$16 sps:$4 sm:$0xff]  }
 0x12b   :  { %2475 = vmatpush1.bf16.msra.mxu0 %v3834_v6  ;;  %2561 = vmatpush1.bf16.msra.mxu1 %v3837_v7  ;;  %v3873_v6 = vld [vmem:[#allocation4 + $0x288] ss:$16 sps:$4 sm:$0xff]   ;;  %v3878_v7 = vld [vmem:[#allocation4 + $0x2a4] ss:$16 sps:$4 sm:$0xff]  }
 0x12c   :  { %2476 = vmatprep.subr.bf16.mxu0 %v3842_v8  ;;  %2562 = vmatprep.subr.bf16.mxu1 %v3845_v9  ;;  %v3881_v8 = vld [vmem:[#allocation4 + $0x2ac] ss:$16 sps:$4 sm:$0xff]   ;;  %v3876_v9 = vld [vmem:[#allocation4 + $0x2a0] ss:$16 sps:$4 sm:$0xff]  }
 0x12f   :  { %2477 = vmatpush1.bf16.msra.mxu0 %v3840_v10  ;;  %2563 = vmatpush1.bf16.msra.mxu1 %v3843_v11  ;;  %v3879_v10 = vld [vmem:[#allocation4 + $0x2a8] ss:$16 sps:$4 sm:$0xff]   ;;  %v3884_v11 = vld [vmem:[#allocation4 + $0x2c4] ss:$16 sps:$4 sm:$0xff]  }
 0x130   :  { %2489 = vmatprep.subr.bf16.mxu0 %v3848_v12  ;;  %2575 = vmatprep.subr.bf16.mxu1 %v3851_v13  ;;  %v3887_v12 = vld [vmem:[#allocation4 + $0x2cc] ss:$16 sps:$4 sm:$0xff]   ;;  %v3882_v13 = vld [vmem:[#allocation4 + $0x2c0] ss:$16 sps:$4 sm:$0xff]  }
 0x1c5   :  { %v1463_v25 = vpop.f32.mrb[0].mxu0  ;;  %v1635_v26 = vpop.f32.mrb[0].mxu1 }
 0x1c6   :  { %v3393_v27 = vadd.f32 %v1463_v25, %v264_v21  ;;  %v3397_v28 = vadd.f32 %v1635_v26, %v272_v22  ;;  %v1465_v29 = vpop.f32.mrb[1].mxu0  ;;  %v1637_v30 = vpop.f32.mrb[1].mxu1  ;;  %v3899_v25 = vld [vmem:[#allocation4 + $0x30c] ss:$16 sps:$4 sm:$0xff]   ;;  %v3894_v26 = vld [vmem:[#allocation4 + $0x300] ss:$16 sps:$4 sm:$0xff]  }
 0x1c7   :  { %v3394_v31 = vadd.f32 %v1465_v29, %v268_v23  ;;  %v3398_v32 = vadd.f32 %v1637_v30, %v276_v24  ;;  %v1467_v33 = vpop.f32.mrb[2].mxu0  ;;  %v1639_v34 = vpop.f32.mrb[2].mxu1  ;;  %v3905_v29 = vld [vmem:[#allocation4 + $0x32c] ss:$16 sps:$4 sm:$0xff]   ;;  %v3900_v30 = vld [vmem:[#allocation4 + $0x320] ss:$16 sps:$4 sm:$0xff]  }
 0x1c8   :  { %v3395_v35 = vadd.f32 %v1467_v33, %v264_v21  ;;  %v3399_v36 = vadd.f32 %v1639_v34, %v272_v22  ;;  %v1469_v37 = vpop.f32.mrb[3].mxu0  ;;  %v1641_v38 = vpop.f32.mrb[3].mxu1  ;;  %v1644_v41 = vmax.f32 %v3393_v27, 0.0  ;;  %v1646_v42 = vmax.f32 %v3397_v28, 0.0  ;;  %v3893_v21 = vld [vmem:[#allocation4 + $0x2ec] ss:$16 sps:$4 sm:$0xff]  }
 0x1c9   :  { %v3396_v39 = vadd.f32 %v1469_v37, %v268_v23  ;;  %v3400_v40 = vadd.f32 %v1641_v38, %v276_v24  ;;  %v1645_v45 = vmax.f32 %v3394_v31, 0.0  ;;  %v1647_v46 = vmax.f32 %v3398_v32, 0.0  ;;  %v3888_v22 = vld [vmem:[#allocation4 + $0x2e0] ss:$16 sps:$4 sm:$0xff]   ;;  %v3891_v23 = vld [vmem:[#allocation4 + $0x2e8] ss:$16 sps:$4 sm:$0xff]  }
 0x1ca   :  { %v1648_v43 = vmax.f32 %v3395_v35, 0.0  ;;  %v1650_v44 = vmax.f32 %v3399_v36, 0.0  ;;  %v3896_v24 = vld [vmem:[#allocation4 + $0x304] ss:$16 sps:$4 sm:$0xff]   ;;  %v3897_v27 = vld [vmem:[#allocation4 + $0x308] ss:$16 sps:$4 sm:$0xff]  }
 0x1cb   :  { %v1649_v47 = vmax.f32 %v3396_v39, 0.0  ;;  %v1651_v48 = vmax.f32 %v3400_v40, 0.0  ;;  %v3902_v28 = vld [vmem:[#allocation4 + $0x324] ss:$16 sps:$4 sm:$0xff]   ;;  %v3903_v31 = vld [vmem:[#allocation4 + $0x328] ss:$16 sps:$4 sm:$0xff]  }
 0x1cc   :  { %v1652_v49 = vpack.c.bf16 %v1648_v43, %v1644_v41  ;;  %v4129_v50 = vpack.c.bf16 %v1650_v44, %v1646_v42  ;;  %v3908_v32 = vld [vmem:[#allocation4 + $0x344] ss:$16 sps:$4 sm:$0xff]   ;;  %v3911_v33 = vld [vmem:[#allocation4 + $0x34c] ss:$16 sps:$4 sm:$0xff]   ;;  %v3906_v34 = vld [vmem:[#allocation4 + $0x340] ss:$16 sps:$4 sm:$0xff]  }
 0x1cd   :  { %v1653_v51 = vpack.c.bf16 %v1649_v47, %v1645_v45  ;;  %v1655_v52 = vpack.c.bf16 %v1651_v48, %v1647_v46  ;;  %v3909_v35 = vld [vmem:[#allocation4 + $0x348] ss:$16 sps:$4 sm:$0xff]   ;;  %v3914_v36 = vld [vmem:[#allocation4 + $0x364] ss:$16 sps:$4 sm:$0xff]   ;;  %v3917_v37 = vld [vmem:[#allocation4 + $0x36c] ss:$16 sps:$4 sm:$0xff]  }
 0x1ce   :  { %v3912_v38 = vld [vmem:[#allocation4 + $0x360] ss:$16 sps:$4 sm:$0xff]   ;;  %v3915_v39 = vld [vmem:[#allocation4 + $0x368] ss:$16 sps:$4 sm:$0xff]   ;;  %v3920_v40 = vld [vmem:[#allocation4 + $0x384] ss:$16 sps:$4 sm:$0xff]  }
 0x1cf   :  { %2478 = vmatprep.mubr.bf16.mxu0 %v1653_v51  ;;  %2564 = vmatprep.mubr.bf16.mxu1 %v1653_v51  ;;  %v3923_v41 = vld [vmem:[#allocation4 + $0x38c] ss:$16 sps:$4 sm:$0xff]   ;;  %v3918_v42 = vld [vmem:[#allocation4 + $0x380] ss:$16 sps:$4 sm:$0xff]   ;;  %v3921_v43 = vld [vmem:[#allocation4 + $0x388] ss:$16 sps:$4 sm:$0xff]  }
 0x1d0   :  { %2479 = vmatmul.mubr.bf16.vlgmr.msra.gmra.mrb[4].mxu0 %v1652_v49  ;;  %2565 = vmatmul.mubr.bf16.vlgmr.msra.gmra.mrb[4].mxu1 %v1652_v49  ;;  %v3926_v44 = vld [vmem:[#allocation4 + $0x3a4] ss:$16 sps:$4 sm:$0xff]   ;;  %v3929_v45 = vld [vmem:[#allocation4 + $0x3ac] ss:$16 sps:$4 sm:$0xff]   ;;  %v3924_v46 = vld [vmem:[#allocation4 + $0x3a0] ss:$16 sps:$4 sm:$0xff]  }
 0x1d1   :  { %2490 = vmatpush1.bf16.msra.mxu0 %v3846_v53  ;;  %2576 = vmatpush1.bf16.msra.mxu1 %v3849_v54  ;;  %v3927_v47 = vld [vmem:[#allocation4 + $0x3a8] ss:$16 sps:$4 sm:$0xff]   ;;  %v3932_v48 = vld [vmem:[#allocation4 + $0x3c4] ss:$16 sps:$4 sm:$0xff]   ;;  %v3935_v49 = vld [vmem:[#allocation4 + $0x3cc] ss:$16 sps:$4 sm:$0xff]  }
 0x1d2   :  { %2521 = vmatprep.mubr.bf16.mxu0 %v1655_v52  ;;  %2607 = vmatprep.mubr.bf16.mxu1 %v1655_v52  ;;  %v3930_v51 = vld [vmem:[#allocation4 + $0x3c0] ss:$16 sps:$4 sm:$0xff]   ;;  %v3933_v52 = vld [vmem:[#allocation4 + $0x3c8] ss:$16 sps:$4 sm:$0xff]   ;;  %v3938_v53 = vld [vmem:[#allocation4 + $0x3e4] ss:$16 sps:$4 sm:$0xff]  }
 0x1d3   :  { %2491 = vmatprep.subr.bf16.mxu0 %v3854_v55  ;;  %2577 = vmatprep.subr.bf16.mxu1 %v3857_v56  ;;  %v3941_v54 = vld [vmem:[#allocation4 + $0x3ec] ss:$16 sps:$4 sm:$0xff]   ;;  %v3936_v55 = vld [vmem:[#allocation4 + $0x3e0] ss:$16 sps:$4 sm:$0xff]   ;;  %v3939_v56 = vld [vmem:[#allocation4 + $0x3e8] ss:$16 sps:$4 sm:$0xff]  }
 0x1d5   :  { %2492 = vmatpush1.bf16.msra.mxu0 %v3852_v57  ;;  %2578 = vmatpush1.bf16.msra.mxu1 %v3855_v58  ;;  %v3942_v57 = vld [vmem:[%s4254_s5 + $0x40] sm:$0xff]  }
 0x1d6   :  { %2493 = vmatprep.subr.bf16.mxu0 %v3860_v59  ;;  %2579 = vmatprep.subr.bf16.mxu1 %v3863_v60  ;;  %v3943_v58 = vld [vmem:[%s4254_s5 + $0xc0] sm:$0xff]  }
 0x1d7   :  { %v3944_v59 = vld [vmem:[%s4254_s5] sm:$0xff]  }
 0x1d8   :  { %v3945_v60 = vld [vmem:[%s4254_s5 + $0x80] sm:$0xff]  }
 0x1d9   :  { %2494 = vmatpush1.bf16.msra.mxu0 %v3858_v61  ;;  %2580 = vmatpush1.bf16.msra.mxu1 %v3861_v62  ;;  %v3946_v61 = vld [vmem:[%s4254_s5 + $0x48] sm:$0xff]  }
 0x1da   :  { %2495 = vmatprep.subr.bf16.mxu0 %v3866_v63  ;;  %2581 = vmatprep.subr.bf16.mxu1 %v3869_v0  ;;  %v3947_v62 = vld [vmem:[%s4254_s5 + $0xc8] sm:$0xff]  }
 0x1db   :  { %v3948_v63 = vld [vmem:[%s4254_s5 + $0x8] sm:$0xff]  }
 0x1dc   :  { %v3949_v0 = vld [vmem:[%s4254_s5 + $0x88] sm:$0xff]  }
 0x1dd   :  { %2496 = vmatpush1.bf16.msra.mxu0 %v3864_v1  ;;  %2582 = vmatpush1.bf16.msra.mxu1 %v3867_v2  ;;  %v3950_v1 = vld [vmem:[%s4254_s5 + $0x50] sm:$0xff]  }
 0x1de   :  { %2497 = vmatprep.subr.bf16.mxu0 %v3872_v3  ;;  %2583 = vmatprep.subr.bf16.mxu1 %v3875_v4  ;;  %v3952_v2 = vld [vmem:[%s4254_s5 + $0x10] sm:$0xff]   ;;  %v3954_v4 = vld [vmem:[%s4254_s5 + $0x58] sm:$0xff]  }
 0x1df   :  { %v3953_v3 = vld [vmem:[%s4254_s5 + $0x90] sm:$0xff]  }
 0x1e1   :  { %2498 = vmatpush1.bf16.msra.mxu0 %v3870_v5  ;;  %2584 = vmatpush1.bf16.msra.mxu1 %v3873_v6  ;;  %v3955_v5 = vld [vmem:[%s4254_s5 + $0xd8] sm:$0xff]  }
 0x1e2   :  { %2499 = vmatprep.subr.bf16.mxu0 %v3878_v7  ;;  %2585 = vmatprep.subr.bf16.mxu1 %v3881_v8  ;;  %v3956_v6 = vld [vmem:[%s4254_s5 + $0x18] sm:$0xff]   ;;  %v3958_v8 = vld [vmem:[%s4254_s5 + $0x60] sm:$0xff]  }
 0x1e3   :  { %v3957_v7 = vld [vmem:[%s4254_s5 + $0x98] sm:$0xff]  }
 0x1e5   :  { %2500 = vmatpush1.bf16.msra.mxu0 %v3876_v9  ;;  %2586 = vmatpush1.bf16.msra.mxu1 %v3879_v10  ;;  %v3959_v9 = vld [vmem:[%s4254_s5 + $0xe0] sm:$0xff]  }
 0x1e6   :  { %2501 = vmatprep.subr.bf16.mxu0 %v3884_v11  ;;  %2587 = vmatprep.subr.bf16.mxu1 %v3887_v12  ;;  %v3960_v10 = vld [vmem:[%s4254_s5 + $0x20] sm:$0xff]   ;;  %v3962_v12 = vld [vmem:[%s4254_s5 + $0x68] sm:$0xff]  }
 0x1e7   :  { %v3961_v11 = vld [vmem:[%s4254_s5 + $0xa0] sm:$0xff]  }
 0x1e9   :  { %2502 = vmatpush1.bf16.msra.mxu0 %v3882_v13  ;;  %2588 = vmatpush1.bf16.msra.mxu1 %v3885_v14  ;;  %v3963_v13 = vld [vmem:[%s4254_s5 + $0xe8] sm:$0xff]  }
 0x1ea   :  { %2503 = vmatprep.subr.bf16.mxu0 %v3890_v18  ;;  %2589 = vmatprep.subr.bf16.mxu1 %v3893_v21  ;;  %v3964_v14 = vld [vmem:[%s4254_s5 + $0x28] sm:$0xff]   ;;  %v3966_v21 = vld [vmem:[%s4254_s5 + $0x70] sm:$0xff]  }
 0x1eb   :  { %v3965_v18 = vld [vmem:[%s4254_s5 + $0xa8] sm:$0xff]  }
 0x1ed   :  { %2504 = vmatpush1.bf16.msra.mxu0 %v3888_v22  ;;  %2590 = vmatpush1.bf16.msra.mxu1 %v3891_v23  ;;  %v3967_v22 = vld [vmem:[%s4254_s5 + $0xf0] sm:$0xff]  }
 0x1ee   :  { %2505 = vmatprep.subr.bf16.mxu0 %v3896_v24  ;;  %2591 = vmatprep.subr.bf16.mxu1 %v3899_v25  ;;  %v3968_v23 = vld [vmem:[%s4254_s5 + $0x30] sm:$0xff]   ;;  %v3970_v25 = vld [vmem:[%s4254_s5 + $0x78] sm:$0xff]  }
 0x1ef   :  { %v3969_v24 = vld [vmem:[%s4254_s5 + $0xb0] sm:$0xff]  }
 0x1f1   :  { %2506 = vmatpush1.bf16.msra.mxu0 %v3894_v26  ;;  %2592 = vmatpush1.bf16.msra.mxu1 %v3897_v27  ;;  %v3971_v26 = vld [vmem:[%s4254_s5 + $0xf8] sm:$0xff]  }
 0x1f2   :  { %2507 = vmatprep.subr.bf16.mxu0 %v3902_v28  ;;  %2593 = vmatprep.subr.bf16.mxu1 %v3905_v29  ;;  %v3972_v27 = vld [vmem:[%s4254_s5 + $0x38] sm:$0xff]   ;;  %v1784_v29 = vld [vmem:[%s4253_s4] sm:$0xf] }
 0x1f3   :  { %v3973_v28 = vld [vmem:[%s4254_s5 + $0xb8] sm:$0xff]  }
 0x1f5   :  { %2508 = vmatpush1.bf16.msra.mxu0 %v3900_v30  ;;  %2594 = vmatpush1.bf16.msra.mxu1 %v3903_v31  ;;  %v1789_v30 = vrot.slane %v1784_v29, %v263_v16  ;;  %v1797_v31 = vrot.slane %v1784_v29, %v271_v17 }
 0x1f6   :  { %2509 = vmatprep.subr.bf16.mxu0 %v3908_v32  ;;  %2595 = vmatprep.subr.bf16.mxu1 %v3911_v33  ;;  %v1793_v32 = vrot.slane %v1784_v29, %v267_v19  ;;  %v1801_v33 = vrot.slane %v1784_v29, %v275_v20 }
 0x1f9   :  { %2510 = vmatpush1.bf16.msra.mxu0 %v3906_v34  ;;  %2596 = vmatpush1.bf16.msra.mxu1 %v3909_v35 }
 0x1fa   :  { %2511 = vmatprep.subr.bf16.mxu0 %v3914_v36  ;;  %2597 = vmatprep.subr.bf16.mxu1 %v3917_v37 }
 0x1fd   :  { %2512 = vmatpush1.bf16.msra.mxu0 %v3912_v38  ;;  %2598 = vmatpush1.bf16.msra.mxu1 %v3915_v39 }
 0x1fe   :  { %2513 = vmatprep.subr.bf16.mxu0 %v3920_v40  ;;  %2599 = vmatprep.subr.bf16.mxu1 %v3923_v41 }
 0x201   :  { %2514 = vmatpush1.bf16.msra.mxu0 %v3918_v42  ;;  %2600 = vmatpush1.bf16.msra.mxu1 %v3921_v43 }
 0x202   :  { %2515 = vmatprep.subr.bf16.mxu0 %v3926_v44  ;;  %2601 = vmatprep.subr.bf16.mxu1 %v3929_v45 }
 0x205   :  { %2516 = vmatpush1.bf16.msra.mxu0 %v3924_v46  ;;  %2602 = vmatpush1.bf16.msra.mxu1 %v3927_v47 }
 0x206   :  { %2517 = vmatprep.subr.bf16.mxu0 %v3932_v48  ;;  %2603 = vmatprep.subr.bf16.mxu1 %v3935_v49 }
 0x209   :  { %2518 = vmatpush1.bf16.msra.mxu0 %v3930_v51  ;;  %2604 = vmatpush1.bf16.msra.mxu1 %v3933_v52 }
 0x20a   :  { %2519 = vmatprep.subr.bf16.mxu0 %v3938_v53  ;;  %2605 = vmatprep.subr.bf16.mxu1 %v3941_v54 }
 0x20d   :  { %2520 = vmatpush1.bf16.msra.mxu0 %v3936_v55  ;;  %2606 = vmatpush1.bf16.msra.mxu1 %v3939_v56 }
 0x20e   :  { %3349 = vmatprep.subr.bf16.mxu0 %v3942_v57  ;;  %3371 = vmatprep.subr.bf16.mxu1 %v3943_v58 }
 0x210   :  { %2522 = vmatmul.mubr.bf16.vlgmr.msra.gmra.mrb[4].mxu0 %v4129_v50  ;;  %2608 = vmatmul.mubr.bf16.vlgmr.msra.gmra.mrb[4].mxu1 %v4129_v50  ;;  %v3951_v50 = vld [vmem:[%s4254_s5 + $0xd0] sm:$0xff]  }
 0x211   :  { %3350 = vmatpush3.bf16.msra.mxu0 %v3944_v59  ;;  %3372 = vmatpush3.bf16.msra.mxu1 %v3945_v60  ;;  %v3316_v60 = vld [vmem:[%s4255_s6] ss:$0 sm:$0xff] }
 0x212   :  { %3351 = vmatprep.subr.bf16.mxu0 %v3946_v61  ;;  %3373 = vmatprep.subr.bf16.mxu1 %v3947_v62 }
 0x215   :  { %3352 = vmatpush3.bf16.msra.mxu0 %v3948_v63  ;;  %3374 = vmatpush3.bf16.msra.mxu1 %v3949_v0 }
 0x216   :  { %3353 = vmatprep.subr.bf16.mxu0 %v3950_v1  ;;  %3375 = vmatprep.subr.bf16.mxu1 %v3951_v50 }
 0x219   :  { %3354 = vmatpush3.bf16.msra.mxu0 %v3952_v2  ;;  %3376 = vmatpush3.bf16.msra.mxu1 %v3953_v3 }
 0x21a   :  { %3355 = vmatprep.subr.bf16.mxu0 %v3954_v4  ;;  %3377 = vmatprep.subr.bf16.mxu1 %v3955_v5 }
 0x21d   :  { %3356 = vmatpush3.bf16.msra.mxu0 %v3956_v6  ;;  %3378 = vmatpush3.bf16.msra.mxu1 %v3957_v7 }
 0x21e   :  { %3357 = vmatprep.subr.bf16.mxu0 %v3958_v8  ;;  %3379 = vmatprep.subr.bf16.mxu1 %v3959_v9 }
 0x221   :  { %3358 = vmatpush3.bf16.msra.mxu0 %v3960_v10  ;;  %3380 = vmatpush3.bf16.msra.mxu1 %v3961_v11 }
 0x222   :  { %3359 = vmatprep.subr.bf16.mxu0 %v3962_v12  ;;  %3381 = vmatprep.subr.bf16.mxu1 %v3963_v13 }
 0x225   :  { %3360 = vmatpush3.bf16.msra.mxu0 %v3964_v14  ;;  %3382 = vmatpush3.bf16.msra.mxu1 %v3965_v18 }
 0x226   :  { %3361 = vmatprep.subr.bf16.mxu0 %v3966_v21  ;;  %3383 = vmatprep.subr.bf16.mxu1 %v3967_v22 }
 0x229   :  { %3362 = vmatpush3.bf16.msra.mxu0 %v3968_v23  ;;  %3384 = vmatpush3.bf16.msra.mxu1 %v3969_v24 }
 0x22a   :  { %3363 = vmatprep.subr.bf16.mxu0 %v3970_v25  ;;  %3385 = vmatprep.subr.bf16.mxu1 %v3971_v26 }
 0x22d   :  { %3364 = vmatpush3.bf16.msra.mxu0 %v3972_v27  ;;  %3386 = vmatpush3.bf16.msra.mxu1 %v3973_v28 }
 0x2e3   :  { %v2523_v34 = vpop.f32.mrb[4].mxu0  ;;  %v2609_v35 = vpop.f32.mrb[4].mxu1 }
 0x2e4   :  { %v3401_v36 = vadd.f32 %v2523_v34, %v1789_v30  ;;  %v3405_v37 = vadd.f32 %v2609_v35, %v1797_v31  ;;  %v2525_v38 = vpop.f32.mrb[5].mxu0  ;;  %v2611_v39 = vpop.f32.mrb[5].mxu1 }
 0x2e5   :  { %v3402_v40 = vadd.f32 %v2525_v38, %v1793_v32  ;;  %v3406_v41 = vadd.f32 %v2611_v39, %v1801_v33  ;;  %v2527_v42 = vpop.f32.mrb[6].mxu0  ;;  %v2613_v43 = vpop.f32.mrb[6].mxu1 }
 0x2e6   :  { %v3403_v16 = vadd.f32 %v2527_v42, %v1789_v30  ;;  %v3407_v44 = vadd.f32 %v2613_v43, %v1797_v31  ;;  %v2529_v45 = vpop.f32.mrb[7].mxu0  ;;  %v2615_v17 = vpop.f32.mrb[7].mxu1  ;;  %v2618_v19 = vmax.f32 %v3401_v36, 0.0  ;;  %v2620_v48 = vmax.f32 %v3405_v37, 0.0 }
 0x2e7   :  { %v3404_v46 = vadd.f32 %v2529_v45, %v1793_v32  ;;  %v3408_v47 = vadd.f32 %v2615_v17, %v1801_v33  ;;  %v2619_v49 = vmax.f32 %v3402_v40, 0.0  ;;  %v2621_v51 = vmax.f32 %v3406_v41, 0.0 }
 0x2e8   :  { %v2622_v15 = vmax.f32 %v3403_v16, 0.0  ;;  %v2624_v20 = vmax.f32 %v3407_v44, 0.0 }
 0x2e9   :  { %v2623_v52 = vmax.f32 %v3404_v46, 0.0  ;;  %v2625_v53 = vmax.f32 %v3408_v47, 0.0 }
 0x2ea   :  { %v2626_v54 = vpack.c.bf16 %v2622_v15, %v2618_v19  ;;  %v2628_v55 = vpack.c.bf16 %v2624_v20, %v2620_v48 }
 0x2eb   :  { %v2627_v56 = vpack.c.bf16 %v2623_v52, %v2619_v49  ;;  %v2629_v57 = vpack.c.bf16 %v2625_v53, %v2621_v51 }
 0x2ed   :  { %2925 = vmatprep.mubr.bf16.mxu0 %v2627_v56  ;;  %2966 = vmatprep.mubr.bf16.mxu1 %v2629_v57 }
 0x2ee   :  { %2926 = vmatmul.mubr.bf16.vlgmr.msra.gmra.mrb[8].mxu0 %v2626_v54  ;;  %2967 = vmatmul.mubr.bf16.vlgmr.msra.gmra.mrb[8].mxu1 %v2628_v55 }
 0x3c1   :  { %v3365_v58 = vpop.f32.mrb[8].mxu0  ;;  %v3387_v59 = vpop.f32.mrb[8].mxu1 }
 0x3c2   :  { %v3366_v61 = vpop.f32.mrb[9].mxu0  ;;  %v3388_v62 = vpop.f32.mrb[9].mxu1 }
 0x3c3   :  { %v3367_v63 = vadd.f32 %v3366_v61, %v3365_v58  ;;  %v3389_v0 = vadd.f32 %v3388_v62, %v3387_v59  ;;  %v3368_v1 = vpop.f32.mrb[10].mxu0  ;;  %v3390_v50 = vpop.f32.mrb[10].mxu1 }
 0x3c4   :  { %v3369_v2 = vpop.f32.mrb[11].mxu0  ;;  %v3391_v3 = vpop.f32.mrb[11].mxu1 }
 0x3c5   :  { %v2928_v4 = vadd.f32 %v3367_v63, %v3316_v60  ;;  %v3370_v5 = vadd.f32 %v3369_v2, %v3368_v1  ;;  %v3392_v6 = vadd.f32 %v3391_v3, %v3390_v50 }
 0x3c7   :  { %v2969_v7 = vadd.f32 %v3389_v0, %v2928_v4  ;;  %v2931_v8 = vadd.f32 %v3370_v5, %v3316_v60 }
 0x3c9   :  { %2975 = vst [vmem:[%s4256_s7] sm:$0xff] %v2969_v7  ;;  %v2972_v9 = vadd.f32 %v3392_v6, %v2931_v8 }
 0x3cb   :  { %2976 = vst [vmem:[%s4256_s7 + $0x8] sm:$0xff] %v2972_v9 }
 0x3cc   :  { %2981 = vsyncpa [#allocation3], 1 }
 0x3cd   :  { %2982 = vsyncpa [#allocation5], 1 }

</bundles_post_ra>
